<compile_context>
chip_gen: v5e
topology: v5e:2x2
jax: 0.10.0
libtpu: 0.0.40
codegen_flags: <defaults>
</compile_context>

<pallas_src>
import math
import functools

import jax
import jax.numpy as jnp
import numpy as np
from jax.experimental import pallas as pl
from jax.experimental.pallas import tpu as pltpu


# ----------------------------- sinusoid table -------------------------------
def get_sinusoid_table(max_len, emb_dim):
    table = np.zeros((max_len, emb_dim), dtype=np.float32)
    for pos in range(max_len):
        for i in range(0, emb_dim, 2):
            angle = pos / 10000 ** (2 * (i // 2) / emb_dim)
            table[pos, i] = math.sin(angle)
            if i + 1 < emb_dim:
                table[pos, i + 1] = math.cos(angle)
    return jnp.asarray(table)


# --------------------------- Pallas kernel body ------------------------------
def encoder_kernel(x_ref, bias_ref, pos_ref,
                   wq_ref, bq_ref, wk_ref, bk_ref, wv_ref, bv_ref,
                   wo_ref, bo_ref, g1_ref, be1_ref, w1_ref, b1_ref,
                   w2_ref, b2_ref, g2_ref, be2_ref, o_ref,
                   *, num_heads, head_dim):
    l = pl.program_id(1)          # layer index ("arbitrary" axis, innermost)

    # Layer 0: fused token + positional embedding add.  o_ref keeps the same
    # block index across the layer axis, so it is the VMEM-resident carried
    # activation for all subsequent layers of this batch block.
    @pl.when(l == 0)
    def _():
        o_ref[...] = x_ref[...] + pos_ref[...][None, :, :]

    Bt, S, E = o_ref.shape
    H, D = num_heads, head_dim

    x = o_ref[...].astype(jnp.float32)          # (Bt, S, E) carried activation
    x2 = x.reshape(Bt * S, E)
    x2b = x2.astype(jnp.bfloat16)

    # ---- QKV projections: bf16 operands, f32 accumulation (native MXU path) ----
    q = jnp.dot(x2b, wq_ref[0], preferred_element_type=jnp.float32) + bq_ref[0]
    k = jnp.dot(x2b, wk_ref[0], preferred_element_type=jnp.float32) + bk_ref[0]
    v = jnp.dot(x2b, wv_ref[0], preferred_element_type=jnp.float32) + bv_ref[0]
    q = q * jnp.float32(1.0 / math.sqrt(D))     # fold 1/sqrt(D) once

    q3 = q.reshape(Bt, S, E).astype(jnp.bfloat16)
    k3 = k.reshape(Bt, S, E).astype(jnp.bfloat16)
    v3 = v.reshape(Bt, S, E).astype(jnp.bfloat16)

    bias = bias_ref[...]                        # (Bt, 1, S): 0 keep / -1e30 masked

    # ---- Per-head attention (softmax in f32).  Heads concatenated so the
    #      output projection is a single K=E MXU dot. ----
    heads = []
    for h in range(H):
        sl = slice(h * D, (h + 1) * D)
        s = jnp.einsum('bqd,bkd->bqk', q3[:, :, sl], k3[:, :, sl],
                       preferred_element_type=jnp.float32)        # (Bt, S, S)
        s = s + bias                                              # broadcast add
        m = jnp.max(s, axis=-1, keepdims=True)
        p = jnp.exp(s - m)
        p = p * pl.reciprocal(jnp.sum(p, axis=-1, keepdims=True), approx=True)
        heads.append(jnp.einsum('bqk,bkd->bqd', p.astype(jnp.bfloat16),
                                v3[:, :, sl],
                                preferred_element_type=jnp.float32))
    attn = jnp.concatenate(heads, axis=-1).reshape(Bt * S, E)

    attn_out = jnp.dot(attn.astype(jnp.bfloat16), wo_ref[0],
                       preferred_element_type=jnp.float32) + bo_ref[0]

    # ---- residual + LayerNorm 1 (f32, eps=1e-6, biased variance) ----
    h1 = x2 + attn_out
    mu1 = jnp.mean(h1, axis=-1, keepdims=True)
    var1 = jnp.mean((h1 - mu1) ** 2, axis=-1, keepdims=True)
    h1n = (h1 - mu1) * jax.lax.rsqrt(var1 + jnp.float32(1e-6)) * g1_ref[0] + be1_ref[0]

    # ---- FFN: Linear -> ReLU -> Linear ----
    f = jnp.dot(h1n.astype(jnp.bfloat16), w1_ref[0],
                preferred_element_type=jnp.float32) + b1_ref[0]
    f = jnp.maximum(f, 0.0)
    f = jnp.dot(f.astype(jnp.bfloat16), w2_ref[0],
                preferred_element_type=jnp.float32) + b2_ref[0]

    # ---- residual + LayerNorm 2 ----
    h2 = h1n + f
    mu2 = jnp.mean(h2, axis=-1, keepdims=True)
    var2 = jnp.mean((h2 - mu2) ** 2, axis=-1, keepdims=True)
    out = (h2 - mu2) * jax.lax.rsqrt(var2 + jnp.float32(1e-6)) * g2_ref[0] + be2_ref[0]

    o_ref[...] = out.reshape(Bt, S, E).astype(o_ref.dtype)


# ------------------------------ Pallas wrapper --------------------------------
_WEIGHT_NAMES = ("wq", "bq", "wk", "bk", "wv", "bv", "wo", "bo",
                 "g1", "be1", "w1", "b1", "w2", "b2", "g2", "be2")


def encoder_forward(params, x_ids, mask, num_heads, *, block_batch=None):
    """Full encoder forward: embedding gather + pos add + all layers."""
    B, S = x_ids.shape
    E = params["tok_emb"].shape[1]
    tok = jnp.take(params["tok_emb"], x_ids, axis=0)      # glue: embedding gather
    pos = params["pos_emb"][:S]                            # glue: table slice
    layers = params["layers"]
    if not layers:
        return tok + pos[None]
    L = len(layers)

    # Additive attention bias: 0 where keep, -1e30 where masked (robust vs -inf
    # for fully-masked rows; the harness keeps >=1 unmasked key per batch).
    bias = jnp.where(mask == 0, jnp.float32(-1e30), jnp.float32(0.0)).reshape(B, 1, S)

    # Stack per-layer weights with a leading layer axis so one pallas_call
    # covers all layers (weights for layer l selected by the grid index_map).
    stacked = {n: jnp.stack([lp[n] for lp in layers], axis=0) for n in _WEIGHT_NAMES}

    if block_batch is None:
        # Prefer >=2 (ideally >=4) "parallel" batch steps so both v7x TCs work.
        for cand in (max(B // 4, 1), max(B // 2, 1), B):
            if B % cand == 0:
                block_batch = cand
                break
    assert B % block_batch == 0
    grid = (B // block_batch, L)

    kernel = functools.partial(encoder_kernel,
                               num_heads=num_heads, head_dim=E // num_heads)

    in_specs = [
        pl.BlockSpec((block_batch, S, E), lambda i, l: (i, 0, 0)),   # tok emb
        pl.BlockSpec((block_batch, 1, S), lambda i, l: (i, 0, 0)),   # additive mask
        pl.BlockSpec((S, E),              lambda i, l: (0, 0)),      # sinusoid slice
    ]
    args = [tok, bias, pos]
    for name in _WEIGHT_NAMES:
        w = stacked[name]                                            # (L, ...) 3-D
        in_specs.append(pl.BlockSpec((1,) + w.shape[1:], lambda i, l: (l, 0, 0)))
        args.append(w)

    # ---- VMEM budget from hardware info (not a hard-coded clamp) ----
    try:
        vmem_cap = int(pltpu.get_tpu_info().vmem_capacity_bytes)
    except Exception:
        vmem_cap = 64 << 20                                          # conservative
    cap = int(0.8 * vmem_cap)                                        # headroom

    F = int(stacked["w1"].shape[2])
    per_layer_w = sum(int(np.prod(stacked[n].shape[1:])) * stacked[n].dtype.itemsize
                      for n in _WEIGHT_NAMES)
    est = (4 * block_batch * S * E * 4           # in/out activation blocks (dbl-buf)
           + 2 * per_layer_w                     # double-buffered per-layer weights
           + 2 * (block_batch * S + S * E) * 4   # mask bias + pos table
           + 10 * block_batch * S * E * 4        # q/k/v/residual/LN intermediates
           + 4 * block_batch * S * S * 4         # scores / probs (f32)
           + 2 * block_batch * S * F * 4)        # FFN hidden
    if est > cap:
        raise ValueError(
            f"Estimated VMEM {est/2**20:.1f} MiB exceeds budget {cap/2**20:.1f} MiB; "
            f"reduce block_batch or tile the sequence / K-V (flash) dimension.")
    vmem_limit = min(max(est + (4 << 20), 32 << 20), cap)

    return pl.pallas_call(
        kernel,
        out_shape=jax.ShapeDtypeStruct((B, S, E), jnp.float32),
        grid=grid,
        in_specs=in_specs,
        out_specs=pl.BlockSpec((block_batch, S, E), lambda i, l: (i, 0, 0)),
        compiler_params=pltpu.CompilerParams(
            dimension_semantics=("parallel", "arbitrary"),
            vmem_limit_bytes=int(vmem_limit),
        ),
    )(*args)


# ------------------------------ parameter init --------------------------------
def _linear_init(key, fan_in, fan_out):
    kw, kb = jax.random.split(key)
    bound = 1.0 / math.sqrt(fan_in)
    # Matmul weights stored bf16 (native MXU dtype, halves HBM/VMEM traffic);
    # biases / LN params stay f32.
    w = jax.random.uniform(kw, (fan_in, fan_out), jnp.float32, -bound, bound)
    b = jax.random.uniform(kb, (1, fan_out), jnp.float32, -bound, bound)
    return w.astype(jnp.bfloat16), b


def init_encoder_params(key, vocab_size, emb_dim, num_layers, num_heads,
                        forward_dim, max_len):
    keys = jax.random.split(key, 1 + num_layers)
    params = {
        "tok_emb": jax.random.normal(keys[0], (vocab_size, emb_dim), jnp.float32),
        "pos_emb": get_sinusoid_table(max_len, emb_dim),
        "layers": [],
    }
    for l in range(num_layers):
        ks = jax.random.split(keys[1 + l], 6)
        wq, bq = _linear_init(ks[0], emb_dim, emb_dim)
        wk, bk = _linear_init(ks[1], emb_dim, emb_dim)
        wv, bv = _linear_init(ks[2], emb_dim, emb_dim)
        wo, bo = _linear_init(ks[3], emb_dim, emb_dim)
        w1, b1 = _linear_init(ks[4], emb_dim, forward_dim)
        w2, b2 = _linear_init(ks[5], forward_dim, emb_dim)
        params["layers"].append(dict(
            wq=wq, bq=bq, wk=wk, bk=bk, wv=wv, bv=bv, wo=wo, bo=bo,
            g1=jnp.ones((1, emb_dim), jnp.float32),
            be1=jnp.zeros((1, emb_dim), jnp.float32),
            w1=w1, b1=b1, w2=w2, b2=b2,
            g2=jnp.ones((1, emb_dim), jnp.float32),
            be2=jnp.zeros((1, emb_dim), jnp.float32),
        ))
    return params


# ------------------------------ pure-JAX reference -----------------------------
def _reference_forward(params, x_ids, mask, num_heads):
    B, S = x_ids.shape
    E = params["tok_emb"].shape[1]
    D = E // num_heads
    h = jnp.take(params["tok_emb"], x_ids, axis=0) + params["pos_emb"][:S][None]
    maskf = mask.astype(jnp.float32).reshape(B, 1, 1, S)
    for p in params["layers"]:
        q = h @ p["wq"].astype(jnp.float32) + p["bq"]
        k = h @ p["wk"].astype(jnp.float32) + p["bk"]
        v = h @ p["wv"].astype(jnp.float32) + p["bv"]
        split = lambda t: t.reshape(B, S, num_heads, D).transpose(0, 2, 1, 3)
        q, k, v = split(q), split(k), split(v)
        sc = (q @ k.transpose(0, 1, 3, 2)) / math.sqrt(D)
        sc = jnp.where(maskf == 0.0, -jnp.inf, sc)
        w = jax.nn.softmax(sc, axis=-1)
        a = (w @ v).transpose(0, 2, 1, 3).reshape(B, S, E)
        a = a @ p["wo"].astype(jnp.float32) + p["bo"]
        h1 = h + a
        mu = h1.mean(-1, keepdims=True)
        var = ((h1 - mu) ** 2).mean(-1, keepdims=True)
        h1 = (h1 - mu) / jnp.sqrt(var + 1e-6) * p["g1"] + p["be1"]
        f = jnp.maximum(h1 @ p["w1"].astype(jnp.float32) + p["b1"], 0.0)
        f = f @ p["w2"].astype(jnp.float32) + p["b2"]
        h2 = h1 + f
        mu = h2.mean(-1, keepdims=True)
        var = ((h2 - mu) ** 2).mean(-1, keepdims=True)
        h = (h2 - mu) / jnp.sqrt(var + 1e-6) * p["g2"] + p["be2"]
    return h


# ------------------------------------ main --------------------------------------
if __name__ == "__main__":
    vocab_size, emb_dim, num_layers, num_heads = 50, 32, 2, 4
    forward_dim, dropout, max_len = 64, 0.0, 16
    B, S = 2, 8

    key = jax.random.PRNGKey(0)
    k_params, k_ids, k_mask = jax.random.split(key, 3)

    params = init_encoder_params(
        k_params, vocab_size, emb_dim, num_layers, num_heads, forward_dim, max_len
    )
    x_ids = jax.random.randint(k_ids, (B, S), 0, vocab_size, dtype=jnp.int32)
    mask = jax.random.bernoulli(k_mask, 0.9, (B, S)).astype(jnp.int32)
    mask = mask.at[:, 0].set(1)   # keep at least one key unmasked per batch

    out = encoder_forward(params, x_ids, mask, num_heads)
    out = jax.block_until_ready(out)

    ref = _reference_forward(params, x_ids, mask, num_heads)
    # Tolerance reflects bf16 MXU operands (and approx-reciprocal softmax)
    # vs. the pure-f32 reference.
    np.testing.assert_allclose(np.asarray(out), np.asarray(ref), rtol=5e-2, atol=5e-2)

    print("KERNEL_OK")
</pallas_src>

<mosaic_0001>
module attributes {stable_mosaic.version = 11 : i64} {
  func.func @encoder_kernel(%arg0: i32, %arg1: i32, %arg2: memref<1x8x32xf32, #tpu.memory_space<vmem>>, %arg3: memref<1x1x8xf32, #tpu.memory_space<vmem>>, %arg4: memref<8x32xf32, #tpu.memory_space<vmem>>, %arg5: memref<1x32x32xbf16, #tpu.memory_space<vmem>>, %arg6: memref<1x1x32xf32, #tpu.memory_space<vmem>>, %arg7: memref<1x32x32xbf16, #tpu.memory_space<vmem>>, %arg8: memref<1x1x32xf32, #tpu.memory_space<vmem>>, %arg9: memref<1x32x32xbf16, #tpu.memory_space<vmem>>, %arg10: memref<1x1x32xf32, #tpu.memory_space<vmem>>, %arg11: memref<1x32x32xbf16, #tpu.memory_space<vmem>>, %arg12: memref<1x1x32xf32, #tpu.memory_space<vmem>>, %arg13: memref<1x1x32xf32, #tpu.memory_space<vmem>>, %arg14: memref<1x1x32xf32, #tpu.memory_space<vmem>>, %arg15: memref<1x32x64xbf16, #tpu.memory_space<vmem>>, %arg16: memref<1x1x64xf32, #tpu.memory_space<vmem>>, %arg17: memref<1x64x32xbf16, #tpu.memory_space<vmem>>, %arg18: memref<1x1x32xf32, #tpu.memory_space<vmem>>, %arg19: memref<1x1x32xf32, #tpu.memory_space<vmem>>, %arg20: memref<1x1x32xf32, #tpu.memory_space<vmem>>, %arg21: memref<1x8x32xf32, #tpu.memory_space<vmem>>) attributes {dimension_semantics = [#tpu.dimension_semantics<parallel>, #tpu.dimension_semantics<arbitrary>], iteration_bounds = array<i64: 2, 2>, scalar_prefetch = 0 : i64, scratch_operands = 0 : i64, tpu.core_type = #tpu.core_type<tc>, window_params = [{transform_indices = @transform_0, window_bounds = array<i64: 1, 8, 32>}, {transform_indices = @transform_1, window_bounds = array<i64: 1, 1, 8>}, {pipeline_mode = #tpu.pipeline_mode<synchronous>, transform_indices = @transform_2, window_bounds = array<i64: 8, 32>}, {transform_indices = @transform_3, window_bounds = array<i64: 1, 32, 32>}, {transform_indices = @transform_4, window_bounds = array<i64: 1, 1, 32>}, {transform_indices = @transform_5, window_bounds = array<i64: 1, 32, 32>}, {transform_indices = @transform_6, window_bounds = array<i64: 1, 1, 32>}, {transform_indices = @transform_7, window_bounds = array<i64: 1, 32, 32>}, {transform_indices = @transform_8, window_bounds = array<i64: 1, 1, 32>}, {transform_indices = @transform_9, window_bounds = array<i64: 1, 32, 32>}, {transform_indices = @transform_10, window_bounds = array<i64: 1, 1, 32>}, {transform_indices = @transform_11, window_bounds = array<i64: 1, 1, 32>}, {transform_indices = @transform_12, window_bounds = array<i64: 1, 1, 32>}, {transform_indices = @transform_13, window_bounds = array<i64: 1, 32, 64>}, {transform_indices = @transform_14, window_bounds = array<i64: 1, 1, 64>}, {transform_indices = @transform_15, window_bounds = array<i64: 1, 64, 32>}, {transform_indices = @transform_16, window_bounds = array<i64: 1, 1, 32>}, {transform_indices = @transform_17, window_bounds = array<i64: 1, 1, 32>}, {transform_indices = @transform_18, window_bounds = array<i64: 1, 1, 32>}, {transform_indices = @transform_19, window_bounds = array<i64: 1, 8, 32>}]} {
    %c0_i32 = arith.constant 0 : i32
    %0 = arith.cmpi eq, %arg1, %c0_i32 : i32
    %1 = arith.extui %0 : i1 to i32
    %c0_i32_0 = arith.constant 0 : i32
    %2 = arith.cmpi ne, %1, %c0_i32_0 : i32
    scf.if %2 {
      %c0_90 = arith.constant 0 : index
      %c0_91 = arith.constant 0 : index
      %c0_92 = arith.constant 0 : index
      %192 = vector.load %arg2[%c0_90, %c0_91, %c0_92] : memref<1x8x32xf32, #tpu.memory_space<vmem>>, vector<1x8x32xf32>
      %c0_93 = arith.constant 0 : index
      %c0_94 = arith.constant 0 : index
      %193 = vector.load %arg4[%c0_93, %c0_94] : memref<8x32xf32, #tpu.memory_space<vmem>>, vector<8x32xf32>
      %194 = vector.shape_cast %193 : vector<8x32xf32> to vector<1x8x32xf32>
      %195 = arith.addf %192, %194 : vector<1x8x32xf32>
      %c0_95 = arith.constant 0 : index
      %c0_96 = arith.constant 0 : index
      %c0_97 = arith.constant 0 : index
      %196 = vector.load %arg21[%c0_95, %c0_96, %c0_97] : memref<1x8x32xf32, #tpu.memory_space<vmem>>, vector<1x8x32xf32>
      tpu.vector_store %arg21[%c0_95, %c0_96, %c0_97], %195 {strides = array<i32>} : memref<1x8x32xf32, #tpu.memory_space<vmem>>, vector<1x8x32xf32>,
    } else {
    }
    %c0 = arith.constant 0 : index
    %c0_1 = arith.constant 0 : index
    %c0_2 = arith.constant 0 : index
    %3 = vector.load %arg21[%c0, %c0_1, %c0_2] : memref<1x8x32xf32, #tpu.memory_space<vmem>>, vector<1x8x32xf32>
    %4 = vector.shape_cast %3 : vector<1x8x32xf32> to vector<8x32xf32>
    %5 = arith.truncf %4 : vector<8x32xf32> to vector<8x32xbf16>
    %c0_3 = arith.constant 0 : index
    %c0_4 = arith.constant 0 : index
    %c0_5 = arith.constant 0 : index
    %6 = vector.load %arg5[%c0_3, %c0_4, %c0_5] : memref<1x32x32xbf16, #tpu.memory_space<vmem>>, vector<1x32x32xbf16>
    %7 = vector.shape_cast %6 : vector<1x32x32xbf16> to vector<32x32xbf16>
    %cst = arith.constant dense<0.000000e+00> : vector<8x32xf32>
    %8 = tpu.matmul %5, %7, %cst {dimension_numbers = #tpu.dot_dimension_numbers<[1], [0], [0], [1], [0, 0, 1, 1], [], []>} : vector<8x32xbf16>, vector<32x32xbf16>, vector<8x32xf32> -> vector<8x32xf32>
    %c0_6 = arith.constant 0 : index
    %c0_7 = arith.constant 0 : index
    %c0_8 = arith.constant 0 : index
    %9 = vector.load %arg6[%c0_6, %c0_7, %c0_8] : memref<1x1x32xf32, #tpu.memory_space<vmem>>, vector<1x1x32xf32>
    %10 = vector.shape_cast %9 : vector<1x1x32xf32> to vector<1x32xf32>
    %11 = vector.broadcast %10 : vector<1x32xf32> to vector<8x32xf32>
    %12 = arith.addf %8, %11 : vector<8x32xf32>
    %c0_9 = arith.constant 0 : index
    %c0_10 = arith.constant 0 : index
    %c0_11 = arith.constant 0 : index
    %13 = vector.load %arg7[%c0_9, %c0_10, %c0_11] : memref<1x32x32xbf16, #tpu.memory_space<vmem>>, vector<1x32x32xbf16>
    %14 = vector.shape_cast %13 : vector<1x32x32xbf16> to vector<32x32xbf16>
    %cst_12 = arith.constant dense<0.000000e+00> : vector<8x32xf32>
    %15 = tpu.matmul %5, %14, %cst_12 {dimension_numbers = #tpu.dot_dimension_numbers<[1], [0], [0], [1], [0, 0, 1, 1], [], []>} : vector<8x32xbf16>, vector<32x32xbf16>, vector<8x32xf32> -> vector<8x32xf32>
    %c0_13 = arith.constant 0 : index
    %c0_14 = arith.constant 0 : index
    %c0_15 = arith.constant 0 : index
    %16 = vector.load %arg8[%c0_13, %c0_14, %c0_15] : memref<1x1x32xf32, #tpu.memory_space<vmem>>, vector<1x1x32xf32>
    %17 = vector.shape_cast %16 : vector<1x1x32xf32> to vector<1x32xf32>
    %18 = vector.broadcast %17 : vector<1x32xf32> to vector<8x32xf32>
    %19 = arith.addf %15, %18 : vector<8x32xf32>
    %c0_16 = arith.constant 0 : index
    %c0_17 = arith.constant 0 : index
    %c0_18 = arith.constant 0 : index
    %20 = vector.load %arg9[%c0_16, %c0_17, %c0_18] : memref<1x32x32xbf16, #tpu.memory_space<vmem>>, vector<1x32x32xbf16>
    %21 = vector.shape_cast %20 : vector<1x32x32xbf16> to vector<32x32xbf16>
    %cst_19 = arith.constant dense<0.000000e+00> : vector<8x32xf32>
    %22 = tpu.matmul %5, %21, %cst_19 {dimension_numbers = #tpu.dot_dimension_numbers<[1], [0], [0], [1], [0, 0, 1, 1], [], []>} : vector<8x32xbf16>, vector<32x32xbf16>, vector<8x32xf32> -> vector<8x32xf32>
    %c0_20 = arith.constant 0 : index
    %c0_21 = arith.constant 0 : index
    %c0_22 = arith.constant 0 : index
    %23 = vector.load %arg10[%c0_20, %c0_21, %c0_22] : memref<1x1x32xf32, #tpu.memory_space<vmem>>, vector<1x1x32xf32>
    %24 = vector.shape_cast %23 : vector<1x1x32xf32> to vector<1x32xf32>
    %25 = vector.broadcast %24 : vector<1x32xf32> to vector<8x32xf32>
    %26 = arith.addf %22, %25 : vector<8x32xf32>
    %cst_23 = arith.constant 0.353553385 : f32
    %27 = vector.broadcast %cst_23 : f32 to vector<8x32xf32>
    %28 = arith.mulf %12, %27 : vector<8x32xf32>
    %29 = vector.shape_cast %28 : vector<8x32xf32> to vector<1x8x32xf32>
    %30 = arith.truncf %29 : vector<1x8x32xf32> to vector<1x8x32xbf16>
    %31 = vector.shape_cast %19 : vector<8x32xf32> to vector<1x8x32xf32>
    %32 = arith.truncf %31 : vector<1x8x32xf32> to vector<1x8x32xbf16>
    %33 = vector.shape_cast %26 : vector<8x32xf32> to vector<1x8x32xf32>
    %34 = arith.truncf %33 : vector<1x8x32xf32> to vector<1x8x32xbf16>
    %c0_24 = arith.constant 0 : index
    %c0_25 = arith.constant 0 : index
    %c0_26 = arith.constant 0 : index
    %35 = vector.load %arg3[%c0_24, %c0_25, %c0_26] : memref<1x1x8xf32, #tpu.memory_space<vmem>>, vector<1x1x8xf32>
    %36 = vector.extract_strided_slice %30 {offsets = [0, 0, 0], sizes = [1, 8, 8], strides = [1, 1, 1]} : vector<1x8x32xbf16> to vector<1x8x8xbf16>
    %37 = vector.extract_strided_slice %32 {offsets = [0, 0, 0], sizes = [1, 8, 8], strides = [1, 1, 1]} : vector<1x8x32xbf16> to vector<1x8x8xbf16>
    "tpu.trace_start"() <{level = 10 : i32, message = "bqd,bkd->bqk"}> : () -> ()
    %cst_27 = arith.constant dense<0.000000e+00> : vector<1x8x8xf32>
    %38 = tpu.matmul %36, %37, %cst_27 {dimension_numbers = #tpu.dot_dimension_numbers<[2], [2], [1], [1], [0, 0, 0, 1, 1, 1], [0], [0]>} : vector<1x8x8xbf16>, vector<1x8x8xbf16>, vector<1x8x8xf32> -> vector<1x8x8xf32>
    "tpu.trace_stop"() : () -> ()
    %39 = vector.broadcast %35 : vector<1x1x8xf32> to vector<1x8x8xf32>
    %40 = arith.addf %38, %39 : vector<1x8x8xf32>
    %cst_28 = arith.constant dense<0xFF800000> : vector<1x8xf32>
    %41 = vector.multi_reduction <maximumf>, %40, %cst_28 [2] : vector<1x8x8xf32> to vector<1x8xf32>
    %42 = vector.shape_cast %41 : vector<1x8xf32> to vector<1x8x1xf32>
    %43 = vector.broadcast %42 : vector<1x8x1xf32> to vector<1x8x8xf32>
    %44 = arith.subf %40, %43 : vector<1x8x8xf32>
    %45 = math.exp %44 : vector<1x8x8xf32>
    %cst_29 = arith.constant dense<0.000000e+00> : vector<1x8xf32>
    %46 = vector.multi_reduction <add>, %45, %cst_29 [2] : vector<1x8x8xf32> to vector<1x8xf32>
    %47 = vector.shape_cast %46 : vector<1x8xf32> to vector<1x8x1xf32>
    %48 = tpu.reciprocal %47 {approx = true} : vector<1x8x1xf32> -> vector<1x8x1xf32>
    %49 = vector.broadcast %48 : vector<1x8x1xf32> to vector<1x8x8xf32>
    %50 = arith.mulf %45, %49 : vector<1x8x8xf32>
    %51 = arith.truncf %50 : vector<1x8x8xf32> to vector<1x8x8xbf16>
    %52 = vector.extract_strided_slice %34 {offsets = [0, 0, 0], sizes = [1, 8, 8], strides = [1, 1, 1]} : vector<1x8x32xbf16> to vector<1x8x8xbf16>
    "tpu.trace_start"() <{level = 10 : i32, message = "bqk,bkd->bqd"}> : () -> ()
    %cst_30 = arith.constant dense<0.000000e+00> : vector<1x8x8xf32>
    %53 = tpu.matmul %51, %52, %cst_30 {dimension_numbers = #tpu.dot_dimension_numbers<[2], [1], [1], [2], [0, 0, 0, 1, 1, 2], [0], [0]>} : vector<1x8x8xbf16>, vector<1x8x8xbf16>, vector<1x8x8xf32> -> vector<1x8x8xf32>
    "tpu.trace_stop"() : () -> ()
    %54 = vector.extract_strided_slice %30 {offsets = [0, 0, 8], sizes = [1, 8, 8], strides = [1, 1, 1]} : vector<1x8x32xbf16> to vector<1x8x8xbf16>
    %55 = vector.extract_strided_slice %32 {offsets = [0, 0, 8], sizes = [1, 8, 8], strides = [1, 1, 1]} : vector<1x8x32xbf16> to vector<1x8x8xbf16>
    "tpu.trace_start"() <{level = 10 : i32, message = "bqd,bkd->bqk"}> : () -> ()
    %cst_31 = arith.constant dense<0.000000e+00> : vector<1x8x8xf32>
    %56 = tpu.matmul %54, %55, %cst_31 {dimension_numbers = #tpu.dot_dimension_numbers<[2], [2], [1], [1], [0, 0, 0, 1, 1, 1], [0], [0]>} : vector<1x8x8xbf16>, vector<1x8x8xbf16>, vector<1x8x8xf32> -> vector<1x8x8xf32>
    "tpu.trace_stop"() : () -> ()
    %57 = vector.broadcast %35 : vector<1x1x8xf32> to vector<1x8x8xf32>
    %58 = arith.addf %56, %57 : vector<1x8x8xf32>
    %cst_32 = arith.constant dense<0xFF800000> : vector<1x8xf32>
    %59 = vector.multi_reduction <maximumf>, %58, %cst_32 [2] : vector<1x8x8xf32> to vector<1x8xf32>
    %60 = vector.shape_cast %59 : vector<1x8xf32> to vector<1x8x1xf32>
    %61 = vector.broadcast %60 : vector<1x8x1xf32> to vector<1x8x8xf32>
    %62 = arith.subf %58, %61 : vector<1x8x8xf32>
    %63 = math.exp %62 : vector<1x8x8xf32>
    %cst_33 = arith.constant dense<0.000000e+00> : vector<1x8xf32>
    %64 = vector.multi_reduction <add>, %63, %cst_33 [2] : vector<1x8x8xf32> to vector<1x8xf32>
    %65 = vector.shape_cast %64 : vector<1x8xf32> to vector<1x8x1xf32>
    %66 = tpu.reciprocal %65 {approx = true} : vector<1x8x1xf32> -> vector<1x8x1xf32>
    %67 = vector.broadcast %66 : vector<1x8x1xf32> to vector<1x8x8xf32>
    %68 = arith.mulf %63, %67 : vector<1x8x8xf32>
    %69 = arith.truncf %68 : vector<1x8x8xf32> to vector<1x8x8xbf16>
    %70 = vector.extract_strided_slice %34 {offsets = [0, 0, 8], sizes = [1, 8, 8], strides = [1, 1, 1]} : vector<1x8x32xbf16> to vector<1x8x8xbf16>
    "tpu.trace_start"() <{level = 10 : i32, message = "bqk,bkd->bqd"}> : () -> ()
    %cst_34 = arith.constant dense<0.000000e+00> : vector<1x8x8xf32>
    %71 = tpu.matmul %69, %70, %cst_34 {dimension_numbers = #tpu.dot_dimension_numbers<[2], [1], [1], [2], [0, 0, 0, 1, 1, 2], [0], [0]>} : vector<1x8x8xbf16>, vector<1x8x8xbf16>, vector<1x8x8xf32> -> vector<1x8x8xf32>
    "tpu.trace_stop"() : () -> ()
    %72 = vector.extract_strided_slice %30 {offsets = [0, 0, 16], sizes = [1, 8, 8], strides = [1, 1, 1]} : vector<1x8x32xbf16> to vector<1x8x8xbf16>
    %73 = vector.extract_strided_slice %32 {offsets = [0, 0, 16], sizes = [1, 8, 8], strides = [1, 1, 1]} : vector<1x8x32xbf16> to vector<1x8x8xbf16>
    "tpu.trace_start"() <{level = 10 : i32, message = "bqd,bkd->bqk"}> : () -> ()
    %cst_35 = arith.constant dense<0.000000e+00> : vector<1x8x8xf32>
    %74 = tpu.matmul %72, %73, %cst_35 {dimension_numbers = #tpu.dot_dimension_numbers<[2], [2], [1], [1], [0, 0, 0, 1, 1, 1], [0], [0]>} : vector<1x8x8xbf16>, vector<1x8x8xbf16>, vector<1x8x8xf32> -> vector<1x8x8xf32>
    "tpu.trace_stop"() : () -> ()
    %75 = vector.broadcast %35 : vector<1x1x8xf32> to vector<1x8x8xf32>
    %76 = arith.addf %74, %75 : vector<1x8x8xf32>
    %cst_36 = arith.constant dense<0xFF800000> : vector<1x8xf32>
    %77 = vector.multi_reduction <maximumf>, %76, %cst_36 [2] : vector<1x8x8xf32> to vector<1x8xf32>
    %78 = vector.shape_cast %77 : vector<1x8xf32> to vector<1x8x1xf32>
    %79 = vector.broadcast %78 : vector<1x8x1xf32> to vector<1x8x8xf32>
    %80 = arith.subf %76, %79 : vector<1x8x8xf32>
    %81 = math.exp %80 : vector<1x8x8xf32>
    %cst_37 = arith.constant dense<0.000000e+00> : vector<1x8xf32>
    %82 = vector.multi_reduction <add>, %81, %cst_37 [2] : vector<1x8x8xf32> to vector<1x8xf32>
    %83 = vector.shape_cast %82 : vector<1x8xf32> to vector<1x8x1xf32>
    %84 = tpu.reciprocal %83 {approx = true} : vector<1x8x1xf32> -> vector<1x8x1xf32>
    %85 = vector.broadcast %84 : vector<1x8x1xf32> to vector<1x8x8xf32>
    %86 = arith.mulf %81, %85 : vector<1x8x8xf32>
    %87 = arith.truncf %86 : vector<1x8x8xf32> to vector<1x8x8xbf16>
    %88 = vector.extract_strided_slice %34 {offsets = [0, 0, 16], sizes = [1, 8, 8], strides = [1, 1, 1]} : vector<1x8x32xbf16> to vector<1x8x8xbf16>
    "tpu.trace_start"() <{level = 10 : i32, message = "bqk,bkd->bqd"}> : () -> ()
    %cst_38 = arith.constant dense<0.000000e+00> : vector<1x8x8xf32>
    %89 = tpu.matmul %87, %88, %cst_38 {dimension_numbers = #tpu.dot_dimension_numbers<[2], [1], [1], [2], [0, 0, 0, 1, 1, 2], [0], [0]>} : vector<1x8x8xbf16>, vector<1x8x8xbf16>, vector<1x8x8xf32> -> vector<1x8x8xf32>
    "tpu.trace_stop"() : () -> ()
    %90 = vector.extract_strided_slice %30 {offsets = [0, 0, 24], sizes = [1, 8, 8], strides = [1, 1, 1]} : vector<1x8x32xbf16> to vector<1x8x8xbf16>
    %91 = vector.extract_strided_slice %32 {offsets = [0, 0, 24], sizes = [1, 8, 8], strides = [1, 1, 1]} : vector<1x8x32xbf16> to vector<1x8x8xbf16>
    "tpu.trace_start"() <{level = 10 : i32, message = "bqd,bkd->bqk"}> : () -> ()
    %cst_39 = arith.constant dense<0.000000e+00> : vector<1x8x8xf32>
    %92 = tpu.matmul %90, %91, %cst_39 {dimension_numbers = #tpu.dot_dimension_numbers<[2], [2], [1], [1], [0, 0, 0, 1, 1, 1], [0], [0]>} : vector<1x8x8xbf16>, vector<1x8x8xbf16>, vector<1x8x8xf32> -> vector<1x8x8xf32>
    "tpu.trace_stop"() : () -> ()
    %93 = vector.broadcast %35 : vector<1x1x8xf32> to vector<1x8x8xf32>
    %94 = arith.addf %92, %93 : vector<1x8x8xf32>
    %cst_40 = arith.constant dense<0xFF800000> : vector<1x8xf32>
    %95 = vector.multi_reduction <maximumf>, %94, %cst_40 [2] : vector<1x8x8xf32> to vector<1x8xf32>
    %96 = vector.shape_cast %95 : vector<1x8xf32> to vector<1x8x1xf32>
    %97 = vector.broadcast %96 : vector<1x8x1xf32> to vector<1x8x8xf32>
    %98 = arith.subf %94, %97 : vector<1x8x8xf32>
    %99 = math.exp %98 : vector<1x8x8xf32>
    %cst_41 = arith.constant dense<0.000000e+00> : vector<1x8xf32>
    %100 = vector.multi_reduction <add>, %99, %cst_41 [2] : vector<1x8x8xf32> to vector<1x8xf32>
    %101 = vector.shape_cast %100 : vector<1x8xf32> to vector<1x8x1xf32>
    %102 = tpu.reciprocal %101 {approx = true} : vector<1x8x1xf32> -> vector<1x8x1xf32>
    %103 = vector.broadcast %102 : vector<1x8x1xf32> to vector<1x8x8xf32>
    %104 = arith.mulf %99, %103 : vector<1x8x8xf32>
    %105 = arith.truncf %104 : vector<1x8x8xf32> to vector<1x8x8xbf16>
    %106 = vector.extract_strided_slice %34 {offsets = [0, 0, 24], sizes = [1, 8, 8], strides = [1, 1, 1]} : vector<1x8x32xbf16> to vector<1x8x8xbf16>
    "tpu.trace_start"() <{level = 10 : i32, message = "bqk,bkd->bqd"}> : () -> ()
    %cst_42 = arith.constant dense<0.000000e+00> : vector<1x8x8xf32>
    %107 = tpu.matmul %105, %106, %cst_42 {dimension_numbers = #tpu.dot_dimension_numbers<[2], [1], [1], [2], [0, 0, 0, 1, 1, 2], [0], [0]>} : vector<1x8x8xbf16>, vector<1x8x8xbf16>, vector<1x8x8xf32> -> vector<1x8x8xf32>
    "tpu.trace_stop"() : () -> ()
    %108 = tpu.concatenate %53, %71, %89, %107 in 2 : vector<1x8x8xf32>, vector<1x8x8xf32>, vector<1x8x8xf32>, vector<1x8x8xf32> -> vector<1x8x32xf32>
    %109 = vector.shape_cast %108 : vector<1x8x32xf32> to vector<8x32xf32>
    %110 = arith.truncf %109 : vector<8x32xf32> to vector<8x32xbf16>
    %c0_43 = arith.constant 0 : index
    %c0_44 = arith.constant 0 : index
    %c0_45 = arith.constant 0 : index
    %111 = vector.load %arg11[%c0_43, %c0_44, %c0_45] : memref<1x32x32xbf16, #tpu.memory_space<vmem>>, vector<1x32x32xbf16>
    %112 = vector.shape_cast %111 : vector<1x32x32xbf16> to vector<32x32xbf16>
    %cst_46 = arith.constant dense<0.000000e+00> : vector<8x32xf32>
    %113 = tpu.matmul %110, %112, %cst_46 {dimension_numbers = #tpu.dot_dimension_numbers<[1], [0], [0], [1], [0, 0, 1, 1], [], []>} : vector<8x32xbf16>, vector<32x32xbf16>, vector<8x32xf32> -> vector<8x32xf32>
    %c0_47 = arith.constant 0 : index
    %c0_48 = arith.constant 0 : index
    %c0_49 = arith.constant 0 : index
    %114 = vector.load %arg12[%c0_47, %c0_48, %c0_49] : memref<1x1x32xf32, #tpu.memory_space<vmem>>, vector<1x1x32xf32>
    %115 = vector.shape_cast %114 : vector<1x1x32xf32> to vector<1x32xf32>
    %116 = vector.broadcast %115 : vector<1x32xf32> to vector<8x32xf32>
    %117 = arith.addf %113, %116 : vector<8x32xf32>
    %118 = arith.addf %4, %117 : vector<8x32xf32>
    %cst_50 = arith.constant dense<0.000000e+00> : vector<8xf32>
    %119 = vector.multi_reduction <add>, %118, %cst_50 [1] : vector<8x32xf32> to vector<8xf32>
    %120 = vector.shape_cast %119 : vector<8xf32> to vector<8x1xf32>
    %cst_51 = arith.constant 3.200000e+01 : f32
    %121 = vector.broadcast %cst_51 : f32 to vector<8x1xf32>
    %122 = arith.divf %120, %121 : vector<8x1xf32>
    %123 = vector.broadcast %122 : vector<8x1xf32> to vector<8x32xf32>
    %124 = arith.subf %118, %123 : vector<8x32xf32>
    %125 = arith.mulf %124, %124 : vector<8x32xf32>
    %cst_52 = arith.constant dense<0.000000e+00> : vector<8xf32>
    %126 = vector.multi_reduction <add>, %125, %cst_52 [1] : vector<8x32xf32> to vector<8xf32>
    %127 = vector.shape_cast %126 : vector<8xf32> to vector<8x1xf32>
    %cst_53 = arith.constant 3.200000e+01 : f32
    %128 = vector.broadcast %cst_53 : f32 to vector<8x1xf32>
    %129 = arith.divf %127, %128 : vector<8x1xf32>
    %130 = vector.broadcast %122 : vector<8x1xf32> to vector<8x32xf32>
    %131 = arith.subf %118, %130 : vector<8x32xf32>
    %cst_54 = arith.constant 9.99999997E-7 : f32
    %132 = vector.broadcast %cst_54 : f32 to vector<8x1xf32>
    %133 = arith.addf %129, %132 : vector<8x1xf32>
    %134 = math.rsqrt %133 : vector<8x1xf32>
    %135 = vector.broadcast %134 : vector<8x1xf32> to vector<8x32xf32>
    %136 = arith.mulf %131, %135 : vector<8x32xf32>
    %c0_55 = arith.constant 0 : index
    %c0_56 = arith.constant 0 : index
    %c0_57 = arith.constant 0 : index
    %137 = vector.load %arg13[%c0_55, %c0_56, %c0_57] : memref<1x1x32xf32, #tpu.memory_space<vmem>>, vector<1x1x32xf32>
    %138 = vector.shape_cast %137 : vector<1x1x32xf32> to vector<1x32xf32>
    %139 = vector.broadcast %138 : vector<1x32xf32> to vector<8x32xf32>
    %140 = arith.mulf %136, %139 : vector<8x32xf32>
    %c0_58 = arith.constant 0 : index
    %c0_59 = arith.constant 0 : index
    %c0_60 = arith.constant 0 : index
    %141 = vector.load %arg14[%c0_58, %c0_59, %c0_60] : memref<1x1x32xf32, #tpu.memory_space<vmem>>, vector<1x1x32xf32>
    %142 = vector.shape_cast %141 : vector<1x1x32xf32> to vector<1x32xf32>
    %143 = vector.broadcast %142 : vector<1x32xf32> to vector<8x32xf32>
    %144 = arith.addf %140, %143 : vector<8x32xf32>
    %145 = arith.truncf %144 : vector<8x32xf32> to vector<8x32xbf16>
    %c0_61 = arith.constant 0 : index
    %c0_62 = arith.constant 0 : index
    %c0_63 = arith.constant 0 : index
    %146 = vector.load %arg15[%c0_61, %c0_62, %c0_63] : memref<1x32x64xbf16, #tpu.memory_space<vmem>>, vector<1x32x64xbf16>
    %147 = vector.shape_cast %146 : vector<1x32x64xbf16> to vector<32x64xbf16>
    %cst_64 = arith.constant dense<0.000000e+00> : vector<8x64xf32>
    %148 = tpu.matmul %145, %147, %cst_64 {dimension_numbers = #tpu.dot_dimension_numbers<[1], [0], [0], [1], [0, 0, 1, 1], [], []>} : vector<8x32xbf16>, vector<32x64xbf16>, vector<8x64xf32> -> vector<8x64xf32>
    %c0_65 = arith.constant 0 : index
    %c0_66 = arith.constant 0 : index
    %c0_67 = arith.constant 0 : index
    %149 = vector.load %arg16[%c0_65, %c0_66, %c0_67] : memref<1x1x64xf32, #tpu.memory_space<vmem>>, vector<1x1x64xf32>
    %150 = vector.shape_cast %149 : vector<1x1x64xf32> to vector<1x64xf32>
    %151 = vector.broadcast %150 : vector<1x64xf32> to vector<8x64xf32>
    %152 = arith.addf %148, %151 : vector<8x64xf32>
    %cst_68 = arith.constant 0.000000e+00 : f32
    %153 = vector.broadcast %cst_68 : f32 to vector<8x64xf32>
    %154 = arith.maximumf %152, %153 : vector<8x64xf32>
    %155 = arith.truncf %154 : vector<8x64xf32> to vector<8x64xbf16>
    %c0_69 = arith.constant 0 : index
    %c0_70 = arith.constant 0 : index
    %c0_71 = arith.constant 0 : index
    %156 = vector.load %arg17[%c0_69, %c0_70, %c0_71] : memref<1x64x32xbf16, #tpu.memory_space<vmem>>, vector<1x64x32xbf16>
    %157 = vector.shape_cast %156 : vector<1x64x32xbf16> to vector<64x32xbf16>
    %cst_72 = arith.constant dense<0.000000e+00> : vector<8x32xf32>
    %158 = tpu.matmul %155, %157, %cst_72 {dimension_numbers = #tpu.dot_dimension_numbers<[1], [0], [0], [1], [0, 0, 1, 1], [], []>} : vector<8x64xbf16>, vector<64x32xbf16>, vector<8x32xf32> -> vector<8x32xf32>
    %c0_73 = arith.constant 0 : index
    %c0_74 = arith.constant 0 : index
    %c0_75 = arith.constant 0 : index
    %159 = vector.load %arg18[%c0_73, %c0_74, %c0_75] : memref<1x1x32xf32, #tpu.memory_space<vmem>>, vector<1x1x32xf32>
    %160 = vector.shape_cast %159 : vector<1x1x32xf32> to vector<1x32xf32>
    %161 = vector.broadcast %160 : vector<1x32xf32> to vector<8x32xf32>
    %162 = arith.addf %158, %161 : vector<8x32xf32>
    %163 = arith.addf %144, %162 : vector<8x32xf32>
    %cst_76 = arith.constant dense<0.000000e+00> : vector<8xf32>
    %164 = vector.multi_reduction <add>, %163, %cst_76 [1] : vector<8x32xf32> to vector<8xf32>
    %165 = vector.shape_cast %164 : vector<8xf32> to vector<8x1xf32>
    %cst_77 = arith.constant 3.200000e+01 : f32
    %166 = vector.broadcast %cst_77 : f32 to vector<8x1xf32>
    %167 = arith.divf %165, %166 : vector<8x1xf32>
    %168 = vector.broadcast %167 : vector<8x1xf32> to vector<8x32xf32>
    %169 = arith.subf %163, %168 : vector<8x32xf32>
    %170 = arith.mulf %169, %169 : vector<8x32xf32>
    %cst_78 = arith.constant dense<0.000000e+00> : vector<8xf32>
    %171 = vector.multi_reduction <add>, %170, %cst_78 [1] : vector<8x32xf32> to vector<8xf32>
    %172 = vector.shape_cast %171 : vector<8xf32> to vector<8x1xf32>
    %cst_79 = arith.constant 3.200000e+01 : f32
    %173 = vector.broadcast %cst_79 : f32 to vector<8x1xf32>
    %174 = arith.divf %172, %173 : vector<8x1xf32>
    %175 = vector.broadcast %167 : vector<8x1xf32> to vector<8x32xf32>
    %176 = arith.subf %163, %175 : vector<8x32xf32>
    %cst_80 = arith.constant 9.99999997E-7 : f32
    %177 = vector.broadcast %cst_80 : f32 to vector<8x1xf32>
    %178 = arith.addf %174, %177 : vector<8x1xf32>
    %179 = math.rsqrt %178 : vector<8x1xf32>
    %180 = vector.broadcast %179 : vector<8x1xf32> to vector<8x32xf32>
    %181 = arith.mulf %176, %180 : vector<8x32xf32>
    %c0_81 = arith.constant 0 : index
    %c0_82 = arith.constant 0 : index
    %c0_83 = arith.constant 0 : index
    %182 = vector.load %arg19[%c0_81, %c0_82, %c0_83] : memref<1x1x32xf32, #tpu.memory_space<vmem>>, vector<1x1x32xf32>
    %183 = vector.shape_cast %182 : vector<1x1x32xf32> to vector<1x32xf32>
    %184 = vector.broadcast %183 : vector<1x32xf32> to vector<8x32xf32>
    %185 = arith.mulf %181, %184 : vector<8x32xf32>
    %c0_84 = arith.constant 0 : index
    %c0_85 = arith.constant 0 : index
    %c0_86 = arith.constant 0 : index
    %186 = vector.load %arg20[%c0_84, %c0_85, %c0_86] : memref<1x1x32xf32, #tpu.memory_space<vmem>>, vector<1x1x32xf32>
    %187 = vector.shape_cast %186 : vector<1x1x32xf32> to vector<1x32xf32>
    %188 = vector.broadcast %187 : vector<1x32xf32> to vector<8x32xf32>
    %189 = arith.addf %185, %188 : vector<8x32xf32>
    %190 = vector.shape_cast %189 : vector<8x32xf32> to vector<1x8x32xf32>
    %c0_87 = arith.constant 0 : index
    %c0_88 = arith.constant 0 : index
    %c0_89 = arith.constant 0 : index
    %191 = vector.load %arg21[%c0_87, %c0_88, %c0_89] : memref<1x8x32xf32, #tpu.memory_space<vmem>>, vector<1x8x32xf32>
    tpu.vector_store %arg21[%c0_87, %c0_88, %c0_89], %190 {strides = array<i32>} : memref<1x8x32xf32, #tpu.memory_space<vmem>>, vector<1x8x32xf32>,
    return
  }
  func.func @transform_0(%arg0: i32, %arg1: i32) -> (i32, i32, i32) {
    %c0_i32 = arith.constant 0 : i32
    %c0_i32_0 = arith.constant 0 : i32
    %c0_i32_1 = arith.constant 0 : i32
    return %arg0, %c0_i32, %c0_i32_0 : i32, i32, i32
  }
  func.func @transform_1(%arg0: i32, %arg1: i32) -> (i32, i32, i32) {
    %c0_i32 = arith.constant 0 : i32
    %c0_i32_0 = arith.constant 0 : i32
    %c0_i32_1 = arith.constant 0 : i32
    return %arg0, %c0_i32, %c0_i32_0 : i32, i32, i32
  }
  func.func @transform_2(%arg0: i32, %arg1: i32) -> (i32, i32) {
    %c0_i32 = arith.constant 0 : i32
    %c0_i32_0 = arith.constant 0 : i32
    %c0_i32_1 = arith.constant 0 : i32
    return %c0_i32, %c0_i32_0 : i32, i32
  }
  func.func @transform_3(%arg0: i32, %arg1: i32) -> (i32, i32, i32) {
    %c0_i32 = arith.constant 0 : i32
    %c0_i32_0 = arith.constant 0 : i32
    %c0_i32_1 = arith.constant 0 : i32
    return %arg1, %c0_i32, %c0_i32_0 : i32, i32, i32
  }
  func.func @transform_4(%arg0: i32, %arg1: i32) -> (i32, i32, i32) {
    %c0_i32 = arith.constant 0 : i32
    %c0_i32_0 = arith.constant 0 : i32
    %c0_i32_1 = arith.constant 0 : i32
    return %arg1, %c0_i32, %c0_i32_0 : i32, i32, i32
  }
  func.func @transform_5(%arg0: i32, %arg1: i32) -> (i32, i32, i32) {
    %c0_i32 = arith.constant 0 : i32
    %c0_i32_0 = arith.constant 0 : i32
    %c0_i32_1 = arith.constant 0 : i32
    return %arg1, %c0_i32, %c0_i32_0 : i32, i32, i32
  }
  func.func @transform_6(%arg0: i32, %arg1: i32) -> (i32, i32, i32) {
    %c0_i32 = arith.constant 0 : i32
    %c0_i32_0 = arith.constant 0 : i32
    %c0_i32_1 = arith.constant 0 : i32
    return %arg1, %c0_i32, %c0_i32_0 : i32, i32, i32
  }
  func.func @transform_7(%arg0: i32, %arg1: i32) -> (i32, i32, i32) {
    %c0_i32 = arith.constant 0 : i32
    %c0_i32_0 = arith.constant 0 : i32
    %c0_i32_1 = arith.constant 0 : i32
    return %arg1, %c0_i32, %c0_i32_0 : i32, i32, i32
  }
  func.func @transform_8(%arg0: i32, %arg1: i32) -> (i32, i32, i32) {
    %c0_i32 = arith.constant 0 : i32
    %c0_i32_0 = arith.constant 0 : i32
    %c0_i32_1 = arith.constant 0 : i32
    return %arg1, %c0_i32, %c0_i32_0 : i32, i32, i32
  }
  func.func @transform_9(%arg0: i32, %arg1: i32) -> (i32, i32, i32) {
    %c0_i32 = arith.constant 0 : i32
    %c0_i32_0 = arith.constant 0 : i32
    %c0_i32_1 = arith.constant 0 : i32
    return %arg1, %c0_i32, %c0_i32_0 : i32, i32, i32
  }
  func.func @transform_10(%arg0: i32, %arg1: i32) -> (i32, i32, i32) {
    %c0_i32 = arith.constant 0 : i32
    %c0_i32_0 = arith.constant 0 : i32
    %c0_i32_1 = arith.constant 0 : i32
    return %arg1, %c0_i32, %c0_i32_0 : i32, i32, i32
  }
  func.func @transform_11(%arg0: i32, %arg1: i32) -> (i32, i32, i32) {
    %c0_i32 = arith.constant 0 : i32
    %c0_i32_0 = arith.constant 0 : i32
    %c0_i32_1 = arith.constant 0 : i32
    return %arg1, %c0_i32, %c0_i32_0 : i32, i32, i32
  }
  func.func @transform_12(%arg0: i32, %arg1: i32) -> (i32, i32, i32) {
    %c0_i32 = arith.constant 0 : i32
    %c0_i32_0 = arith.constant 0 : i32
    %c0_i32_1 = arith.constant 0 : i32
    return %arg1, %c0_i32, %c0_i32_0 : i32, i32, i32
  }
  func.func @transform_13(%arg0: i32, %arg1: i32) -> (i32, i32, i32) {
    %c0_i32 = arith.constant 0 : i32
    %c0_i32_0 = arith.constant 0 : i32
    %c0_i32_1 = arith.constant 0 : i32
    return %arg1, %c0_i32, %c0_i32_0 : i32, i32, i32
  }
  func.func @transform_14(%arg0: i32, %arg1: i32) -> (i32, i32, i32) {
    %c0_i32 = arith.constant 0 : i32
    %c0_i32_0 = arith.constant 0 : i32
    %c0_i32_1 = arith.constant 0 : i32
    return %arg1, %c0_i32, %c0_i32_0 : i32, i32, i32
  }
  func.func @transform_15(%arg0: i32, %arg1: i32) -> (i32, i32, i32) {
    %c0_i32 = arith.constant 0 : i32
    %c0_i32_0 = arith.constant 0 : i32
    %c0_i32_1 = arith.constant 0 : i32
    return %arg1, %c0_i32, %c0_i32_0 : i32, i32, i32
  }
  func.func @transform_16(%arg0: i32, %arg1: i32) -> (i32, i32, i32) {
    %c0_i32 = arith.constant 0 : i32
    %c0_i32_0 = arith.constant 0 : i32
    %c0_i32_1 = arith.constant 0 : i32
    return %arg1, %c0_i32, %c0_i32_0 : i32, i32, i32
  }
  func.func @transform_17(%arg0: i32, %arg1: i32) -> (i32, i32, i32) {
    %c0_i32 = arith.constant 0 : i32
    %c0_i32_0 = arith.constant 0 : i32
    %c0_i32_1 = arith.constant 0 : i32
    return %arg1, %c0_i32, %c0_i32_0 : i32, i32, i32
  }
  func.func @transform_18(%arg0: i32, %arg1: i32) -> (i32, i32, i32) {
    %c0_i32 = arith.constant 0 : i32
    %c0_i32_0 = arith.constant 0 : i32
    %c0_i32_1 = arith.constant 0 : i32
    return %arg1, %c0_i32, %c0_i32_0 : i32, i32, i32
  }
  func.func @transform_19(%arg0: i32, %arg1: i32) -> (i32, i32, i32) {
    %c0_i32 = arith.constant 0 : i32
    %c0_i32_0 = arith.constant 0 : i32
    %c0_i32_1 = arith.constant 0 : i32
    return %arg0, %c0_i32, %c0_i32_0 : i32, i32, i32
  }
}

</mosaic_0001>

<bundles_post_ra>
// kernel: tpu_custom_call.1
= control target key start
LH: loop header
LB: loop body
LE: loop exit
PB: predicated region body
PF: predicated region fallthrough
CT: control target
= control target key end

     0   :  { %s3148_s0 = inlined_call_operand.hbm [shape: f32[2,8,32], index: 0, kind: input, shape index: {}]   ;;  %s3149_s1 = inlined_call_operand.hbm [shape: f32[2,1,8], index: 1, kind: input, shape index: {}]   ;;  %s3150_s2 = inlined_call_operand.hbm [shape: f32[8,32], index: 2, kind: input, shape index: {}]   ;;  %s3151_s3 = inlined_call_operand.vmem [shape: bf16[2,32,32], index: 3, kind: input, shape index: {}]   ;;  %s3152_s4 = inlined_call_operand.vmem [shape: f32[2,1,32], index: 4, kind: input, shape index: {}]   ;;  %s3153_s5 = inlined_call_operand.vmem [shape: bf16[2,32,32], index: 5, kind: input, shape index: {}]   ;;  %s3154_s6 = inlined_call_operand.vmem [shape: f32[2,1,32], index: 6, kind: input, shape index: {}]   ;;  %s3155_s7 = inlined_call_operand.vmem [shape: bf16[2,32,32], index: 7, kind: input, shape index: {}]   ;;  %s3156_s8 = inlined_call_operand.vmem [shape: f32[2,1,32], index: 8, kind: input, shape index: {}]   ;;  %s3157_s9 = inlined_call_operand.hbm [shape: bf16[2,32,32], index: 9, kind: input, shape index: {}]   ;;  %s3158_s10 = inlined_call_operand.vmem [shape: f32[2,1,32], index: 10, kind: input, shape index: {}]   ;;  %s3159_s11 = inlined_call_operand.hbm [shape: f32[2,1,32], index: 11, kind: input, shape index: {}]   ;;  %s3160_s12 = inlined_call_operand.vmem [shape: f32[2,1,32], index: 12, kind: input, shape index: {}]   ;;  %s3161_s13 = inlined_call_operand.hbm [shape: bf16[2,32,64], index: 13, kind: input, shape index: {}]   ;;  %s3162_s14 = inlined_call_operand.vmem [shape: f32[2,1,64], index: 14, kind: input, shape index: {}]   ;;  %s3163_s15 = inlined_call_operand.vmem [shape: bf16[2,64,32], index: 15, kind: input, shape index: {}]   ;;  %s3164_s16 = inlined_call_operand.vmem [shape: f32[2,1,32], index: 16, kind: input, shape index: {}]   ;;  %s3165_s17 = inlined_call_operand.hbm [shape: f32[2,1,32], index: 17, kind: input, shape index: {}]   ;;  %s3166_s18 = inlined_call_operand.vmem [shape: f32[2,1,32], index: 18, kind: input, shape index: {}]   ;;  %s3167_s19 = inlined_call_operand.hbm [shape: f32[2,8,32], index: 19, kind: output, shape index: {}]  }
   0x1   :  { %3191 = sst [smem:[#allocation39_spill]] %s3148_s0 }
   0x2   :  { %3192 = sst [smem:[#allocation40_spill]] %s3149_s1 }
   0x3   :  { %3193 = sst [smem:[#allocation41_spill]] %s3150_s2 }
   0x4   :  { %3194 = sst [smem:[#allocation42_spill]] %s3151_s3 }
   0x5   :  { %3195 = sst [smem:[#allocation43_spill]] %s3152_s4 }
   0x6   :  { %3196 = sst [smem:[#allocation44_spill]] %s3153_s5 }
   0x7   :  { %3197 = sst [smem:[#allocation45_spill]] %s3154_s6 }
   0x8   :  { %3198 = sst [smem:[#allocation46_spill]] %s3155_s7 }
   0x9   :  { %3199 = sst [smem:[#allocation47_spill]] %s3156_s8 }
   0xa   :  { %3200 = sst [smem:[#allocation48_spill]] %s3157_s9 }
   0xb   :  { %3201 = sst [smem:[#allocation49_spill]] %s3158_s10 }
   0xc   :  { %3202 = sst [smem:[#allocation50_spill]] %s3159_s11 }
   0xd   :  { %3203 = sst [smem:[#allocation51_spill]] %s3160_s12 }
   0xe   :  { %3204 = sst [smem:[#allocation52_spill]] %s3161_s13 }
   0xf   :  { %3205 = sst [smem:[#allocation53_spill]] %s3162_s14 }
  0x10   :  { %3206 = sst [smem:[#allocation54_spill]] %s3163_s15 }
  0x11   :  { %3207 = sst [smem:[#allocation55_spill]] %s3164_s16 }
  0x12   :  { %3208 = sst [smem:[#allocation56_spill]] %s3165_s17 }
  0x13   :  { %3209 = sst [smem:[#allocation57_spill]] %s3166_s18 }
  0x14   :  { %3210 = sst [smem:[#allocation58_spill]] %s3167_s19 }
  0x15   :  { %24 = vsyncpa [#allocation3], 0 }
  0x16   :  { %26 = vsyncpa [#allocation3 + $0x1], 0 }
  0x17   :  { %27 = vsyncpa [#allocation6], 0 }
  0x18   :  { %29 = vsyncpa [#allocation6 + $0x1], 0 }
  0x19   :  { %30 = vsyncpa [#allocation9], 0 }
  0x1a   :  { %32 = vsyncpa [#allocation9 + $0x1], 0 }
  0x1b   :  { %33 = vsyncpa [#allocation12], 0 }
  0x1c   :  { %35 = vsyncpa [#allocation12 + $0x1], 0 }
  0x1d   :  { %36 = vsyncpa [#allocation4], 0 }
  0x1e   :  { %38 = vsyncpa [#allocation4 + $0x1], 0  ;;  %s2678_s0 = smov 0   ;;  %s2680_s30 = smov 0  }
  0x1f   :  { %s2682_s20 = smov 0   ;;  %s2684_s21 = smov 0  }
  0x20   :  { %s2686_s1 = smov 0   ;;  %s2688_s22 = smov 0  }
  0x21   :  { %s2690_s2 = smov 0   ;;  %s2692_s23 = smov 0  }
  0x22   :  { %s2694_s24 = smov 0   ;;  %s2696_s25 = smov 0  }
  0x23   :  { %s2698_s3 = smov 0  }
  0x24 LB: > { %3211 = sst [smem:[#allocation21_spill]] %s2530_s30  ;;  %s2732_s26 = sadd.s32 4294967295, %s2566_s3   ;;  %s2566_s3 = sphi %s2698_s3, %s44_s3   ;;  %s2562_s25 = sphi %s2696_s25, %s3294_s25   ;;  %s2558_s24 = sphi %s2694_s24, %s3293_s24   ;;  %s2554_s23 = sphi %s2692_s23, %s3292_s23   ;;  %s2550_s2 = sphi %s2690_s2, %s3291_s2   ;;  %s2546_s22 = sphi %s2688_s22, %s3290_s22   ;;  %s2542_s1 = sphi %s2686_s1, %s3289_s1   ;;  %s2538_s21 = sphi %s2684_s21, %s3288_s21   ;;  %s2534_s20 = sphi %s2682_s20, %s3287_s20   ;;  %s2530_s30 = sphi %s2680_s30, %s3286_s30   ;;  %s2526_s0 = sphi %s2678_s0, %s3285_s0  }
  0x25   : > { %3212 = sst [smem:[#allocation22_spill]] %s2534_s20  ;;  %p305_p0 = scmp.ne.s32.totalorder %s2530_s30, %s2526_s0 }
  0x26   : > { %3213 = sst [smem:[#allocation23_spill]] %s2538_s21  ;;  %p3174_p1 = scmp.eq.s32.totalorder %s2732_s26, 0 }
  0x27   : > { %3214 = sst [smem:[#allocation24_spill]] %s2542_s1  ;;  %p563_p2 = scmp.eq.s32.totalorder %s2732_s26, 3 }
  0x28   : > { %3215 = sst [smem:[#allocation25_spill]] %s2546_s22  ;;  %p1918_p3 = scmp.ge.s32.totalorder %s2566_s3, 1 }
  0x29   : > { %3216 = sst [smem:[#allocation26_spill]] %s2550_s2  ;;  %p576_p4 = scmp.lt.s32.totalorder %s2566_s3, 5 }
  0x2a   : > { %3217 = sst [smem:[#allocation27_spill]] %s2554_s23  ;;  %p2741_p5 = por %p305_p0, %p3174_p1 }
  0x2b   : > { %3218 = sst [smem:[#allocation28_spill]] %s2558_s24  ;;  %p2745_p6 = pnand %p1918_p3, %p576_p4 }
  0x2c   : > { %3219 = sst [smem:[#allocation29_spill]] %s2562_s25  ;;  %s2568_s18 = smov [#allocation7]  }
  0x2d   : > { %3220 = sst [smem:[#allocation30_spill]] %s2566_s3  ;;  %p2056_p7 = pneg %p2745_p6 }
  0x2e   : > { %s3221_s27 = scalar_select %p2741_p5, 1, 0 }
  0x2f   : > { %s3224_s19 = sld [smem:[#allocation41_spill]]  ;;  %s590_s15 = sshll.u32 %s2568_s18, 4  ;;  %s591_s15 = int_to_ptr.vmem [resolvable:$true] %s590_s15 }
  0x30   : > { %3222 = sst [smem:[#allocation31_spill]] %s3221_s27  ;;  %p2057_p8 = pnand %p2056_p7, %p3174_p1 }
  0x31   : > { %s53_s16 = sadd.s32 1, %s2558_s24  ;;  %p71_p9 = scmp.eq.s32.totalorder %s2566_s3, 0 }
  0x32   : > { %p2758_p10 = scmp.ge.s32.totalorder %s53_s16, 2  ;;  %p299_p11 = scmp.ne.s32.totalorder %s2534_s20, %s2530_s30 }
  0x33   : > { %p2084_p12 = scmp.lt.s32.totalorder %s2566_s3, 4  ;;  %s2782_s0 = sand.u32 1, %s2534_s20  }
  0x34   : > { %s3296_s16 = smov (%p2758_p10, %s53_s16), 0  ;;  %p2772_p13 = por %p299_p11, %p71_p9 }
  0x35   : > { %s588_s23 = sshll.u32 %s3224_s19, 4  ;;  %s292_s19 = sadd.s32 1, %s2534_s20  ;;  %s589_s23 = int_to_ptr.hbm [resolvable:$true] %s588_s23 }
  0x36   : > { %2059 = dma.hbm_to_vmem [thread:$0]  (!%p2057_p8), %s589_s23, 128, %s591_s15, [#allocation6]  }
  0x37   : > { %3226 = sst [smem:[#allocation32_spill]] %s3296_s16  ;;  %s2777_s15 = sand.u32 1, %s2566_s3  }
  0x38   : > { %s289_s23 = ssub.s32 %s2558_s24, %s3296_s16  ;;  %s1923_s14 = sshll.u32 %s2782_s0, 4 }
  0x39   : > { %p290_p0 = scmp.eq.s32.totalorder %s289_s23, 0  ;;  %s2018_s12 = sshll.u32 %s2558_s24, 4 }
  0x3a   : > { %s3229_s9 = sld [smem:[#allocation48_spill]]  ;;  %s683_s4 = scalar_lea.vmem [#allocation8], %s1923_s14 }
  0x3b   : > { %s2787_s10 = scalar_select %p290_p0, %s2534_s20, %s292_s19  }
  0x3c   : > { %s691_s2 = sshll.u32 %s683_s4, 4  ;;  %p2796_p3 = pnand %p2084_p12, %p2772_p13  ;;  %s692_s2 = int_to_ptr.vmem [resolvable:$true] %s691_s2 }
  0x3d   : > { %3228 = sst [smem:[#allocation33_spill]] %s2787_s10  ;;  %s2569_s7 = smov 64  }
  0x3e   : > { %s2570_s4 = smov 4   ;;  %s3231_s13 = sld [smem:[#allocation52_spill]] }
  0x3f   : > { %s3175_s20 = scalar_lea.sflag [#allocation12], %s2777_s15  ;;  %s1917_s27 = sadd.s32 4294967294, %s2566_s3  }
  0x40   : > { %s688_s6 = scalar_lea.hbm %s3229_s9, %s2018_s12  ;;  %s734_s9 = scalar_lea.vmem [#allocation11], %s1923_s14 }
  0x41   : > { %s689_s5 = sshll.u32 %s688_s6, 4  ;;  %s3176_s6 = scalar_lea.sflag [#allocation9], %s2777_s15  ;;  %s690_s5 = int_to_ptr.hbm [resolvable:$true] %s689_s5 }
  0x42   : > { %2069 = dma.hbm_to_vmem [thread:$0]  (!%p2796_p3), %s690_s5, 256, %s692_s2, %s3176_s6, %s2569_s7, %s2569_s7, %s2570_s4  }
  0x43   : > { %s742_s16 = sshll.u32 %s734_s9, 4  ;;  %s56_s5 = sadd.s32 1, %s2562_s25  ;;  %s743_s16 = int_to_ptr.vmem [resolvable:$true] %s742_s16 }
  0x44   : > { %s739_s18 = scalar_lea.hbm %s3231_s13, %s2018_s12  ;;  %s63_s2 = sadd.s32 1, %s2546_s22 }
  0x45   : > { %s740_s10 = sshll.u32 %s739_s18, 4  ;;  %s3298_s5 = smov (!%p2758_p10, %s56_s5), %s2562_s25  ;;  %s741_s10 = int_to_ptr.hbm [resolvable:$true] %s740_s10 }
  0x46   : > { %2075 = dma.hbm_to_vmem [thread:$0]  (!%p2796_p3), %s741_s10, 256, %s743_s16, %s3175_s20, %s2569_s7, %s2569_s7, %s2570_s4  }
  0x47   : > { %p70_p4 = scmp.ne.s32.totalorder %s2546_s22, %s2542_s1  ;;  %p76_p7 = scmp.ne.s32.totalorder %s2542_s1, %s2538_s21 }
  0x48   : > { %p58_p8 = scmp.ge.s32.totalorder %s3298_s5, 2  ;;  %p569_p11 = scmp.eq.s32.totalorder %s1917_s27, 3 }
  0x49   : > { %p2825_p13 = por %p71_p9, %p70_p4  ;;  %p2831_p0 = por %p3174_p1, %p76_p7 }
  0x4a   : > { %s3300_s5 = smov (%p58_p8, %s3298_s5), 0  ;;  %p2839_p10 = por %p563_p2, %p70_p4 }
  0x4b   : > { %3234 = sst [smem:[#allocation34_spill]] %s3300_s5  ;;  %p2843_p9 = por %p569_p11, %p76_p7 }
  0x4c   : > { %s3235_s10 = scalar_select %p2839_p10, 1, 0 }
  0x4d   : > { %s3237_s14 = scalar_select %p2843_p9, 1, 0 }
  0x4e   : > { %3236 = sst [smem:[#allocation35_spill]] %s3235_s10  ;;  %s60_s16 = ssub.s32 %s2562_s25, %s3300_s5 }
  0x4f   : > { %3238 = sst [smem:[#allocation36_spill]] %s3237_s14  ;;  %s601_s27 = sand.u32 1, %s2546_s22  }
  0x50   : > { %p61_p1 = scmp.eq.s32.totalorder %s60_s16, 0  ;;  %s1921_s29 = sshll.u32 %s601_s27, 3 }
  0x51   : > { %s1922_s7 = sshll.u32 %s2562_s25, 3  ;;  %s3240_s18 = sld [smem:[#allocation39_spill]] }
  0x52   : > { %s2852_s4 = scalar_select %p61_p1, %s2546_s22, %s63_s2  }
  0x53   : > { %s605_s13 = scalar_lea.vmem [#allocation2], %s1921_s29  ;;  %p2061_p2 = pnand %p2084_p12, %p2825_p13 }
  0x54   : > { %3239 = sst [smem:[#allocation37_spill]] %s2852_s4  ;;  %s613_s21 = sshll.u32 %s605_s13, 4  ;;  %s614_s21 = int_to_ptr.vmem [resolvable:$true] %s613_s21 }
  0x55   : > { %s3241_s14 = sld [smem:[#allocation40_spill]]  ;;  %s602_s8 = scalar_lea.sflag [#allocation3], %s601_s27 }
  0x56   : > { %s621_s13 = scalar_lea.sflag [#allocation6], %s2777_s15  ;;  %s3242_s11 = sld [smem:[#allocation50_spill]] }
  0x57   : > { %s609_s20 = scalar_lea.hbm %s3240_s18, %s1922_s7  ;;  %s3243_s16 = scalar_lea.sflag [#allocation9], %s2777_s15 }
  0x58   : > { %s611_s6 = sshll.u32 %s609_s20, 4  ;;  %s623_s20 = scalar_lea.vmem [#allocation5], %s601_s27  ;;  %s612_s6 = int_to_ptr.hbm [resolvable:$true] %s611_s6 }
  0x59   : > { %2063 = dma.hbm_to_vmem [thread:$0]  (!%p2061_p2), %s612_s6, 128, %s614_s21, %s602_s8  }
  0x5a   : > { %s630_s29 = sshll.u32 %s623_s20, 4  ;;  %s3244_s17 = sld [smem:[#allocation56_spill]]  ;;  %s631_s29 = int_to_ptr.vmem [resolvable:$true] %s630_s29 }
  0x5b   : > { %s626_s2 = scalar_lea.hbm %s3241_s14, %s2562_s25  ;;  %s710_s14 = scalar_lea.vmem [#allocation10], %s2782_s0 }
  0x5c   : > { %s628_s4 = sshll.u32 %s626_s2, 4  ;;  %s713_s5 = scalar_lea.hbm %s3242_s11, %s2558_s24  ;;  %s629_s4 = int_to_ptr.hbm [resolvable:$true] %s628_s4 }
  0x5d   : > { %2066 = dma.hbm_to_vmem [thread:$0]  (!%p2061_p2), %s629_s4, 16, %s631_s29, %s621_s13  }
  0x5e   : > { %s717_s19 = sshll.u32 %s710_s14, 4  ;;  %s715_s18 = sshll.u32 %s713_s5, 4  ;;  %s718_s19 = int_to_ptr.vmem [resolvable:$true] %s717_s19  ;;  %s716_s18 = int_to_ptr.hbm [resolvable:$true] %s715_s18 }
  0x5f   : > { %2072 = dma.hbm_to_vmem [thread:$0]  (!%p2796_p3), %s716_s18, 16, %s718_s19, %s3243_s16  }
  0x60   : > { %s778_s27 = scalar_lea.hbm %s3244_s17, %s2558_s24  ;;  %s775_s2 = scalar_lea.vmem [#allocation13], %s2782_s0 }
  0x61   : > { %s782_s8 = sshll.u32 %s775_s2, 4  ;;  %s780_s20 = sshll.u32 %s778_s27, 4  ;;  %s783_s8 = int_to_ptr.vmem [resolvable:$true] %s782_s8  ;;  %s781_s20 = int_to_ptr.hbm [resolvable:$true] %s780_s20 }
  0x62   : > { %s3245_s4 = scalar_lea.sflag [#allocation12], %s2777_s15  ;;  %797 = sbr.rel (%p2745_p6) target bundleno = 2020 (0x7e4), region = 96 }
  0x63   : > { %2078 = dma.hbm_to_vmem [thread:$0]  (!%p2796_p3), %s781_s20, 16, %s783_s8, %s3245_s4  }
  0x67   : > { %s2887_s29 = sand.u32 1, %s2542_s1  }
  0x68   : > { %s3180_s13 = sshll.u32 %s2887_s29, 3  ;;  %s800_s9 = scalar_lea.sflag [#allocation3], %s2887_s29 }
  0x69   : > { %s2893_s0 = scalar_lea.vmem [#allocation2], %s3180_s13 }
  0x6a   : > { %2501 = dma.done.wait (%p2831_p0), %s800_s9, 128  }
  0x6b   : > { %2503 = vsyncadd (%p2831_p0), %s800_s9, 4294967168  ;;  %s809_s28 = sand.u32 1, %s2732_s26  }
  0x6c   : > { %s810_s15 = scalar_lea.sflag [#allocation6], %s809_s28 }
  0x6d   : > { %2505 = dma.done.wait (%p2831_p0), %s810_s15, 16  }
  0x6e   : > { %2507 = vsyncadd (%p2831_p0), %s810_s15, 4294967280  ;;  %p3246_p1 = scmp.eq.s32.totalorder %s2732_s26, 0 }
  0x70   : > { %2509 = dma.done.wait (%p3246_p1), [#allocation6], 128   ;;  %p3247_p6 = pmov %p3246_p1 }
  0x71   : > { %s2910_s5 = sand.u32 1, %s2530_s30   ;;  %s824_s19 = scalar_lea.sflag [#allocation9], %s809_s28 }
  0x72   : > { %2511 = vsyncadd (%p3247_p6), [#allocation6], 4294967168  ;;  %s1932_s14 = sshll.u32 %s2910_s5, 4 }
  0x73   : > { %s2913_s18 = scalar_lea.vmem [#allocation8], %s1932_s14 }
  0x74   : > { %2513 = dma.done.wait (%p2741_p5), %s824_s19, 272  }
  0x75   : > { %2515 = vsyncadd (%p2741_p5), %s824_s19, 4294967024  ;;  %s843_s16 = scalar_lea.sflag [#allocation12], %s809_s28  ;;  %s2920_s26 = scalar_lea.vmem [#allocation11], %s1932_s14 }
  0x76   : > { %3249 = sst [smem:[#allocation38_spill]] %s2920_s26 }
  0x77   : > { %2517 = dma.done.wait (%p2741_p5), %s843_s16, 272  }
  0x78   : > { %2519 = vsyncadd (%p2741_p5), %s843_s16, 4294967024  ;;  %s3250_s21 = sld [smem:[#allocation26_spill]]  ;;  %s855_s3 = scalar_lea.vmem [#allocation13], %s2910_s5 }
  0x79   : > { %s3252_s15 = sld [smem:[#allocation42_spill]]  ;;  %s3263_s14 = sshll.u32 %s2887_s29, 3 }
  0x7a   : > { %s3253_s16 = sld [smem:[#allocation44_spill]] }
  0x7b   : > { %s3255_s22 = sld [smem:[#allocation46_spill]] }
  0x7c   : > { %s3256_s8 = sld [smem:[#allocation47_spill]] }
  0x7d   : > { %s3258_s19 = sld [smem:[#allocation51_spill]] }
  0x7e   : > { %p977_p12 = scmp.lt.s32.totalorder %s3250_s21, 1  ;;  %s3259_s11 = sld [smem:[#allocation53_spill]] }
  0x7f   : > { %s3260_s25 = sld [smem:[#allocation55_spill]]  ;;  %p1943_p5 = scmp.ne.s32.totalorder %s3250_s21, 0 }
  0x80   : > { %s2928_s6 = scalar_select %p977_p12, %s3250_s21, 1 }
  0x81   : > { %s3261_s2 = sld [smem:[#allocation54_spill]] }
  0x82   : > { %s2020_s27 = sshll.u32 %s2928_s6, 4  ;;  %s1000_s20 = scalar_lea.vmem %s3256_s8, %s2928_s6 }
  0x83   : > { %s981_s7 = scalar_lea.vmem %s3252_s15, %s2020_s27  ;;  %s989_s12 = scalar_lea.vmem %s3253_s16, %s2020_s27 }
  0x84   : > { %s2948_s1 = scalar_lea.vmem %s3255_s22, %s2020_s27  ;;  %s1006_s16 = scalar_lea.vmem %s3258_s19, %s2928_s6 }
  0x85   : > { %s1009_s23 = scalar_lea.vmem %s3259_s11, %s2928_s6  ;;  %s2023_s17 = sshll.u32 %s2928_s6, 5 }
  0x86   : > { %s1017_s27 = scalar_lea.vmem %s3260_s25, %s2928_s6  ;;  %s3262_s28 = sld [smem:[#allocation57_spill]] }
  0x87   : > { %s2974_s8 = scalar_lea.vmem %s3261_s2, %s2023_s17  ;;  %s2983_s19 = scalar_lea.vmem [#allocation14], %s3263_s14 }
  0x88   : > { %1025 = sbr.rel (%p1943_p5) target bundleno = 145 (0x91), region = 128 }
  0x8c   : > { %s1020_s15 = scalar_lea.vmem %s3262_s28, %s2928_s6 }
  0x8d   : > { %v1026_v0 = vld [vmem:[%s2893_s0] sm:$0xff]  ;;  %v1027_v1 = vld [vmem:[#allocation7] sm:$0xff]  ;;  %vm1029_vm0 = vcmask 261120  }
  0x8e   : > { %v1028_v2 = vadd.f32 %v1027_v1, %v1026_v0 }
  0x90   : > { %1030 = vst.msk [vmem:[%s2983_s19] sm:$0xff] %vm1029_vm0, %v1028_v2 }
  0x91 PF: > { %v2025_v3 = vld [vmem:[%s981_s7 + $0x8] sm:$0xff]  ;;  %v2024_v5 = vld [vmem:[%s981_s7] sm:$0xff]  ;;  %vm1053_vm1 = vcmask 261120   ;;  %s3264_s0 = sld [smem:[#allocation43_spill]]  ;;  %vm1144_vm2 = vcmask 64512   ;;  %s2571_s11 = smov 112  }
  0x92   : > { %v2027_v4 = vld [vmem:[%s989_s12 + $0x8] sm:$0xff]  ;;  %v2026_v6 = vld [vmem:[%s989_s12] sm:$0xff]  ;;  %1063 = vmatpush.bf16.msra.mxu0 %v2025_v3  ;;  %s3266_s7 = sld [smem:[#allocation45_spill]]  ;;  %s2572_s24 = smov 120   ;;  %vm1179_vm3 = vcmask 1043456   ;;  %vm1386_vm4 = vcmask 130048  }
  0x93   : > { %1096 = vmatpush.bf16.msra.mxu1 %v2027_v4  ;;  %s2573_s22 = smov 104   ;;  %v2029_v25 = vld [vmem:[%s2948_s1 + $0x8] sm:$0xff]  ;;  %s3268_s25 = scalar_lea.vmem [#allocation5], %s2887_s29  ;;  %v2028_v40 = vld [vmem:[%s2948_s1] sm:$0xff]  ;;  %vm1388_vm5 = vcmask 195584   ;;  %vm1542_vm10 = vcmask 523264  }
  0x94   : > { %1129 = vmatpush.bf16.msra.mxu2 %v2029_v25  ;;  %v2187_v34 = vld [vmem:[%s3268_s25] ss:$0 sm:$0xff]  ;;  %s2575_s4 = smov 24   ;;  %s2576_s9 = smov 16  }
  0x95   : > { %v2188_v58 = vld [vmem:[%s1000_s20] ss:$0 sm:$0xff]  ;;  %s2574_s20 = smov 8   ;;  %s3270_s17 = sld [smem:[#allocation49_spill]] }
  0x96   : > { %1064 = vmatpush.bf16.msra.mxu0 %v2024_v5  ;;  %s3278_s1 = sld [smem:[#allocation58_spill]]  ;;  %s1606_s14 = sshll.u32 %s2983_s19, 4  ;;  %s1607_s14 = int_to_ptr.vmem [resolvable:$true] %s1606_s14 }
  0x97   : > { %v2989_v7 = vld [vmem:[%s2983_s19] sm:$0xff]  ;;  %1097 = vmatpush.bf16.msra.mxu1 %v2026_v6  ;;  %s3265_s26 = scalar_lea.vmem %s3264_s0, %s2928_s6  ;;  %s3273_s0 = scalar_lea.vmem [#allocation10], %s2910_s5 }
  0x98   : > { %v1032_v8 = vpack.c.bf16 %v2989_v7, %v2989_v7  ;;  %v2185_v9 = vld [vmem:[%s3265_s26] ss:$0 sm:$0xff]  ;;  %s3267_s13 = scalar_lea.vmem %s3266_s7, %s2928_s6  ;;  %1130 = vmatpush.bf16.msra.mxu2 %v2028_v40  ;;  %s1594_s5 = scalar_lea.sflag [#allocation4], %s2887_s29 }
  0x99   : > { %v2186_v10 = vld [vmem:[%s3267_s13] ss:$0 sm:$0xff] }
  0x9a   : > { %1952 = vmatmul.msk.bf16.vlgmr.msra.gmra.mxu0 %vm1053_vm1, %v1032_v8  ;;  %1961 = vmatmul.msk.bf16.vlgmr.msra.gmra.mxu1 %vm1053_vm1, %v1032_v8 }
  0x9b   : > { %1970 = vmatmul.msk.bf16.vlgmr.msra.gmra.mxu2 %vm1053_vm1, %v1032_v8  ;;  %s3271_s10 = scalar_lea.vmem %s3270_s17, %s2928_s6 }
 0x117   : > { %v1066_v11 = vpop.f32.mrf.mxu0  ;;  %v1099_v12 = vpop.f32.mrf.mxu1 }
 0x118   : > { %v1067_v13 = vadd.f32 %v2185_v9, %v1066_v11  ;;  %v1100_v14 = vadd.f32 %v2186_v10, %v1099_v12 }
 0x11a   : > { %v1136_v15 = vmul.f32 0.35355338, %v1067_v13  ;;  %v1138_v16 = vpack.c.bf16 %v1100_v14, %v1100_v14 }
 0x11c   : > { %v1137_v17 = vpack.c.bf16 %v1136_v15, %v1136_v15  ;;  %v1202_v18 = vunpack.c.l.b16 %v1138_v16  ;;  %v1149_v19 = vsel %vm1144_vm2, %v1138_v16, 0 }
 0x11d   : > { %1158 = vmatpush.bf16.xpose.msra.mxu3 %v1149_v19 }
 0x11e   : > { %v1197_v20 = vunpack.c.l.b16 %v1137_v17  ;;  %v1203_v21 = vpack.c.b16 %v1202_v18, %v1202_v18  ;;  %v1132_v59 = vpop.f32.mrf.mxu2 }
 0x11f   : > { %v1068_v22 = vpop.f32.mrf.mxu0  ;;  %v1101_v23 = vpop.f32.mrf.mxu1  ;;  %v1133_v60 = vadd.f32 %v2188_v58, %v1132_v59 }
 0x120   : > { %1263 = vrot.lane.b32.xlu1 %v1203_v21, %s2571_s11  ;;  %1204 = vrot.lane.b32.xlu0 %v1203_v21, %s2572_s24  ;;  %v1198_v24 = vpack.c.b16 %v1197_v20, %v1197_v20 }
 0x121   : > { %v1139_v61 = vpack.c.bf16 %v1133_v60, %v1133_v60 }
 0x122   : > { %1261 = vrot.lane.b32.xlu2 %v1198_v24, %s2571_s11 }
 0x123   : > { %v1238_v62 = vunpack.c.l.b16 %v1139_v61  ;;  %v1181_v63 = vsel %vm1179_vm3, %v1139_v61, 0 }
 0x124   : > { %1971 = vmatmul.msk.bf16.vlgmr.msra.gmra.mxu3 %vm1144_vm2, %v1137_v17  ;;  %1190 = vmatpush.bf16.msrb.mxu0 %v1181_v63  ;;  %v2577_v63 = vmov 32.0  }
 0x125   : > { %v1239_v0 = vpack.c.b16 %v1238_v62, %v1238_v62 }
 0x126   : > { %v1134_v1 = vpop.f32.mrf.mxu2 }
 0x128   : > { %1319 = vrot.lane.b32.xlu1 %v1203_v21, %s2573_s22  ;;  %1199 = vrot.lane.b32.xlu0 %v1198_v24, %s2572_s24 }
 0x12a   : > { %1317 = vrot.lane.b32.xlu2 %v1198_v24, %s2573_s22 }
 0x17c   : > { %v1262_v30 = vpop.permute.xlu2 %1261 }
 0x184   : > { %v1318_v37 = vpop.permute.xlu2 %1317 }
 0x192   : > { %v1264_v26 = vpop.permute.xlu1 %1263  ;;  %v1205_v27 = vpop.permute.xlu0 %1204 }
 0x193   : > { %v1210_v28 = vsel %vm1144_vm2, %v1205_v27, 0  ;;  %v1269_v29 = vsel %vm1144_vm2, %v1264_v26, 0 }
 0x194   : > { %1219 = vmatpush.bf16.xpose.msrb.mxu1 %v1210_v28  ;;  %1278 = vmatpush.bf16.xpose.msrb.mxu3 %v1269_v29 }
 0x19a   : > { %v1320_v31 = vpop.permute.xlu1 %1319  ;;  %v1200_v32 = vpop.permute.xlu0 %1199 }
 0x19b   : > { %v1325_v33 = vsel %vm1144_vm2, %v1320_v31, 0  ;;  %1973 = vmatmul.msk.bf16.vlgmr.msrb.gmra.mxu1 %vm1144_vm2, %v1200_v32  ;;  %1975 = vmatmul.msk.bf16.vlgmr.msrb.gmra.mxu3 %vm1144_vm2, %v1262_v30 }
 0x19c   : > { %1334 = vmatpush.bf16.xpose.msra.mxu1 %v1325_v33 }
 0x1a7   : > { %v1160_v35 = vpop.f32.mrf.mxu3 }
 0x1a8   : > { %v1161_v36 = vadd.f32 %v2187_v34, %v1160_v35 }
 0x1aa   : > { %v1164_v38 = vsel %vm1144_vm2, %v1161_v36, -inf }
 0x1ab   : > { %1977 = vmatmul.msk.bf16.vlgmr.msra.gmra.mxu1 %vm1144_vm2, %v1318_v37  ;;  %1165 = vmax.xlane.f32.xlu1 %v1164_v38 }
 0x1af   : > { %v1162_v39 = vpop.f32.mrf.mxu3 }
 0x218   : > { %v1221_v41 = vpop.f32.mrf.mxu1 }
 0x219   : > { %v1222_v42 = vadd.f32 %v2187_v34, %v1221_v41 }
 0x21b   : > { %v1225_v43 = vsel %vm1144_vm2, %v1222_v42, -inf }
 0x21c   : > { %1226 = vmax.xlane.f32.xlu0 %v1225_v43 }
 0x21e   : > { %v1280_v44 = vpop.f32.mrf.mxu3  ;;  %v1166_v45 = vpop.xlane.xlu1 %1165 }
 0x21f   : > { %v1167_v46 = vsub.f32 %v1161_v36, %v1166_v45  ;;  %v1281_v55 = vadd.f32 %v2187_v34, %v1280_v44 }
 0x220   : > { %v1223_v47 = vpop.f32.mrf.mxu1 }
 0x221   : > { %v1168_v48 = vmul.f32 1.442695, %v1167_v46  ;;  %v1284_v57 = vsel %vm1144_vm2, %v1281_v55, -inf }
 0x223   : > { %2196 = vpow2.f32 %v1168_v48  ;;  %v2031_v48 = vld [vmem:[%s2913_s18 + $0x8] sm:$0xff] }
 0x224   : > { %1420 = vmatpush.bf16.msra.mxu3 %v2031_v48 }
 0x226   : > { %v1282_v49 = vpop.f32.mrf.mxu3 }
 0x227   : > { %v2030_v49 = vld [vmem:[%s2913_s18] sm:$0xff]  ;;  %s3272_s18 = sld [smem:[#allocation38_spill]] }
 0x228   : > { %v1336_v50 = vpop.f32.mrf.mxu1  ;;  %1421 = vmatpush.bf16.msra.mxu3 %v2030_v49 }
 0x229   : > { %v2197_v51 = vpop.eup %2196  ;;  %v1337_v52 = vadd.f32 %v2187_v34, %v1336_v50 }
 0x22a   : > { %v1170_v53 = vsel %vm1144_vm2, %v2197_v51, 0.0 }
 0x22b   : > { %1171 = vadd.xlane.f32.xlu1 %v1170_v53  ;;  %v1340_v54 = vsel %vm1144_vm2, %v1337_v52, -inf }
 0x22c   : > { %1341 = vmax.xlane.f32.xlu2 %v1340_v54 }
 0x230   : > { %v1338_v56 = vpop.f32.mrf.mxu1 }
 0x234   : > { %1285 = vmax.xlane.f32.xlu2 %v1284_v57  ;;  %v2189_v57 = vld [vmem:[%s3271_s10] ss:$0 sm:$0xff] }
 0x24c   : > { %1240 = vrot.lane.b32.xlu2 %v1239_v0, %s2572_s24 }
 0x28f   : > { %v1227_v2 = vpop.xlane.xlu0 %1226 }
 0x290   : > { %v1228_v3 = vsub.f32 %v1222_v42, %v1227_v2 }
 0x292   : > { %v1229_v4 = vmul.f32 1.442695, %v1228_v3 }
 0x294   : > { %2198 = vpow2.f32 %v1229_v4 }
 0x29a   : > { %v2199_v5 = vpop.eup %2198 }
 0x29b   : > { %v1231_v6 = vsel %vm1144_vm2, %v2199_v5, 0.0 }
 0x29c   : > { %1232 = vadd.xlane.f32.xlu0 %v1231_v6 }
 0x29e   : > { %v1172_v8 = vpop.xlane.xlu1 %1171 }
 0x29f   : > { %2200 = vrcp.f32 %v1172_v8  ;;  %v1342_v9 = vpop.xlane.xlu2 %1341 }
 0x2a0   : > { %v1343_v10 = vsub.f32 %v1337_v52, %v1342_v9 }
 0x2a2   : > { %v1344_v11 = vmul.f32 1.442695, %v1343_v10 }
 0x2a4   : > { %2202 = vpow2.f32 %v1344_v11  ;;  %v2033_v11 = vld [vmem:[%s3272_s18 + $0x8] sm:$0xff] }
 0x2a5   : > { %v2201_v12 = vpop.eup %2200 }
 0x2a6   : > { %v1174_v13 = vmul.f32 %v2201_v12, %v2197_v51  ;;  %v2032_v12 = vld [vmem:[%s3272_s18] sm:$0xff] }
 0x2a7   : > { %v1286_v14 = vpop.xlane.xlu2 %1285 }
 0x2a8   : > { %v1287_v15 = vsub.f32 %v1281_v55, %v1286_v14  ;;  %v1175_v16 = vpack.c.bf16 %v1174_v13, %v1174_v13  ;;  %v2037_v13 = vld [vmem:[%s2974_s8 + $0x18] sm:$0xff] }
 0x2a9   : > { %1550 = vmatpush.bf16.msrb.mxu1 %v2037_v13 }
 0x2aa   : > { %v2203_v17 = vpop.eup %2202  ;;  %v1288_v18 = vmul.f32 1.442695, %v1287_v15  ;;  %1972 = vmatmul.msk.bf16.vlgmr.msrb.gmra.mxu0 %vm1144_vm2, %v1175_v16  ;;  %v2036_v16 = vld [vmem:[%s2974_s8 + $0x10] sm:$0xff] }
 0x2ab   : > { %v1346_v19 = vsel %vm1144_vm2, %v2203_v17, 0.0 }
 0x2ac   : > { %2204 = vpow2.f32 %v1288_v18  ;;  %1347 = vadd.xlane.f32.xlu0 %v1346_v19 }
 0x2ad   : > { %1551 = vmatpush.bf16.msrb.mxu1 %v2036_v16 }
 0x2af   : > { %v1241_v22 = vpop.permute.xlu2 %1240 }
 0x2b0   : > { %v1246_v23 = vsel %vm1179_vm3, %v1241_v22, 0 }
 0x2b1   : > { %1255 = vmatpush.bf16.msrb.mxu2 %v1246_v23 }
 0x2b2   : > { %v2205_v20 = vpop.eup %2204 }
 0x2b3   : > { %v1290_v21 = vsel %vm1144_vm2, %v2205_v20, 0.0 }
 0x2b4   : > { %1291 = vadd.xlane.f32.xlu1 %v1290_v21 }
 0x2c0   : > { %1352 = vrot.lane.b32.xlu0 %v1239_v0, %s2573_s22 }
 0x2cd   : > { %1296 = vrot.lane.b32.xlu1 %v1239_v0, %s2571_s11 }
 0x30f   : > { %v1233_v24 = vpop.xlane.xlu0 %1232 }
 0x310   : > { %2206 = vrcp.f32 %v1233_v24  ;;  %v2190_v24 = vld [vmem:[%s3273_s0] ss:$0 sm:$0xff] }
 0x316   : > { %v2207_v25 = vpop.eup %2206 }
 0x317   : > { %v1235_v26 = vmul.f32 %v2207_v25, %v2199_v5 }
 0x319   : > { %v1236_v27 = vpack.c.bf16 %v1235_v26, %v1235_v26  ;;  %v2191_v26 = vld [vmem:[%s1006_s16] ss:$0 sm:$0xff] }
 0x31b   : > { %1974 = vmatmul.msk.bf16.vlgmr.msrb.gmra.mxu2 %vm1144_vm2, %v1236_v27 }
 0x31f   : > { %v1348_v28 = vpop.xlane.xlu0 %1347 }
 0x320   : > { %2208 = vrcp.f32 %v1348_v28 }
 0x326   : > { %v2209_v30 = vpop.eup %2208 }
 0x327   : > { %v1192_v29 = vpop.f32.mrf.mxu0  ;;  %v1350_v32 = vmul.f32 %v2209_v30, %v2203_v17  ;;  %v1292_v33 = vpop.xlane.xlu1 %1291 }
 0x328   : > { %2210 = vrcp.f32 %v1292_v33  ;;  %v2192_v33 = vld [vmem:[%s1009_s23] ss:$0 sm:$0xff]  ;;  %s3277_s23 = sld [smem:[#allocation27_spill]] }
 0x329   : > { %v1351_v36 = vpack.c.bf16 %v1350_v32, %v1350_v32  ;;  %2212 = vrcp.f32 %v2577_v63  ;;  %v2034_v32 = vld [vmem:[%s2974_s8] sm:$0xff] }
 0x32e   : > { %v2211_v37 = vpop.eup %2210 }
 0x32f   : > { %v1194_v31 = vpop.f32.mrf.mxu0  ;;  %v1294_v38 = vmul.f32 %v2211_v37, %v2205_v20  ;;  %v2213_v0 = vpop.eup %2212 }
 0x330   : > { %v1432_v1 = vmul.f32 32.0, %v2213_v0  ;;  %vm1436_vm6 = vweird.f32 %v2213_v0  ;;  %v2035_v31 = vld [vmem:[%s2974_s8 + $0x8] sm:$0xff] }
 0x331   : > { %v1295_v41 = vpack.c.bf16 %v1294_v38, %v1294_v38  ;;  %1552 = vmatpush.bf16.msrb.mxu1 %v2035_v31 }
 0x332   : > { %v1353_v34 = vpop.permute.xlu0 %1352  ;;  %v1433_v2 = vsub.f32 1.0, %v1432_v1 }
 0x333   : > { %v1358_v35 = vsel %vm1179_vm3, %v1353_v34, 0 }
 0x334   : > { %1367 = vmatpush.bf16.msra.mxu2 %v1358_v35  ;;  %v1434_v3 = vmul.f32 %v2213_v0, %v1433_v2 }
 0x335   : > { %1553 = vmatpush.bf16.msrb.mxu1 %v2034_v32 }
 0x336   : > { %v1435_v4 = vadd.f32 %v2213_v0, %v1434_v3 }
 0x337   : > { %1978 = vmatmul.msk.bf16.vlgmr.msra.gmra.mxu2 %vm1144_vm2, %v1351_v36 }
 0x338   : > { %v1437_v5 = vsel %vm1436_vm6, %v2213_v0, %v1435_v4 }
 0x33f   : > { %v1297_v39 = vpop.permute.xlu1 %1296 }
 0x340   : > { %v1302_v40 = vsel %vm1179_vm3, %v1297_v39, 0  ;;  %v2193_v39 = vld [vmem:[%s1017_s27] ss:$0 sm:$0xff]  ;;  %s2015_s27 = sshll.u32 %s3277_s23, 3 }
 0x341   : > { %1311 = vmatpush.bf16.msra.mxu0 %v1302_v40  ;;  %s1604_s30 = scalar_lea.hbm %s3278_s1, %s2015_s27 }
 0x342   : > { %s1608_s17 = sshll.u32 %s1604_s30, 4  ;;  %s1609_s17 = int_to_ptr.hbm [resolvable:$true] %s1608_s17 }
 0x344   : > { %1976 = vmatmul.msk.bf16.vlgmr.msra.gmra.mxu0 %vm1144_vm2, %v1295_v41 }
 0x345   : > { %1497 = vmatpush.bf16.msrb.mxu0 %v2033_v11 }
 0x349   : > { %1498 = vmatpush.bf16.msrb.mxu0 %v2032_v12 }
 0x39e   : > { %v1257_v42 = vpop.f32.mrf.mxu2 }
 0x39f   : > { %1374 = vrot.lane.b32.xlu2 %v1257_v42, %s2574_s20 }
 0x3a6   : > { %v1259_v43 = vpop.f32.mrf.mxu2 }
 0x3ba   : > { %v1369_v44 = vpop.f32.mrf.mxu2 }
 0x3bb   : > { %1382 = vrot.lane.b32.xlu2 %v1369_v44, %s2575_s4  ;;  %s3279_s4 = smov %s3278_s1 }
 0x3bc   : > { %s2448_s6 = scalar_lea.hbm %s3279_s4, 16 }
 0x3c1   : > { %v1313_v45 = vpop.f32.mrf.mxu0 }
 0x3c2   : > { %v1371_v46 = vpop.f32.mrf.mxu2  ;;  %1378 = vrot.lane.b32.xlu0 %v1313_v45, %s2576_s9 }
 0x3c9   : > { %v1315_v47 = vpop.f32.mrf.mxu0 }
 0x3f9   : > { %v1375_v50 = vpop.permute.xlu2 %1374 }
 0x3fa   : > { %v1385_v51 = vsel %vm1144_vm2, %v1192_v29, %v1375_v50 }
 0x415   : > { %v1383_v53 = vpop.permute.xlu2 %1382 }
 0x434   : > { %v1379_v52 = vpop.permute.xlu0 %1378 }
 0x435   : > { %v1387_v54 = vsel %vm1386_vm4, %v1385_v51, %v1379_v52 }
 0x436   : > { %v1389_v55 = vsel %vm1388_vm5, %v1387_v54, %v1383_v53 }
 0x437   : > { %v1390_v56 = vpack.c.bf16 %v1389_v55, %v1389_v55 }
 0x439   : > { %1987 = vmatmul.msk.bf16.vlgmr.msra.gmra.mxu3 %vm1053_vm1, %v1390_v56 }
 0x4bc   : > { %v1423_v58 = vpop.f32.mrf.mxu3 }
 0x4bd   : > { %v1424_v59 = vadd.f32 %v2189_v57, %v1423_v58 }
 0x4bf   : > { %v1427_v60 = vadd.f32 %v1424_v59, %v2989_v7  ;;  %v2194_v59 = vld [vmem:[%s855_s3] ss:$0 sm:$0xff]  ;;  %s2442_s3 = sshra.s32 %s1609_s17, 4  ;;  %s2443_s3 = int_to_ptr.hbm [resolvable:$true] %s2442_s3 }
 0x4c0   : > { %s2444_s10 = scalar_lea.hbm %s2443_s3, 8  ;;  %p2449_p8 = scmp.lt.s32.totalorder %s2443_s3, %s3279_s4 }
 0x4c1   : > { %v1428_v61 = vsel %vm1053_vm1, %v1427_v60, 0.0  ;;  %p2445_p3 = scmp.ne.s32.totalorder %s2443_s3, %s2444_s10  ;;  %p2450_p11 = scmp.lt.s32.totalorder %s2448_s6, %s2444_s10 }
 0x4c2   : > { %1429 = vadd.xlane.f32.xlu1 %v1428_v61 }
 0x4c3   : > { %p2446_p4 = pnand %p2445_p3, %p2839_p10  ;;  %p2451_p13 = por %p2450_p11, %p2449_p8 }
 0x4c4   : > { %v1425_v62 = vpop.f32.mrf.mxu3 }
 0x4c5   : > { %v2195_v62 = vld [vmem:[%s1020_s15] ss:$0 sm:$0xff]  ;;  %p2447_p7 = pneg %p2446_p4 }
 0x4c7   : > { %p2452_p0 = pnand %p2451_p13, %p2447_p7 }
 0x535   : > { %v1430_v6 = vpop.xlane.xlu1 %1429 }
 0x536   : > { %v1438_v8 = vmul.f32 %v1437_v5, %v1430_v6 }
 0x538   : > { %v1439_v7 = vsub.f32 %v1427_v60, %v1438_v8 }
 0x53a   : > { %v1440_v9 = vmul.f32 %v1439_v7, %v1439_v7 }
 0x53c   : > { %v1441_v10 = vsel %vm1053_vm1, %v1440_v9, 0.0 }
 0x53d   : > { %1442 = vadd.xlane.f32.xlu0 %v1441_v10 }
 0x5b0   : > { %v1443_v14 = vpop.xlane.xlu0 %1442 }
 0x5b1   : > { %v1444_v15 = vmul.f32 %v1443_v14, %v1437_v5 }
 0x5b3   : > { %v1445_v17 = vadd.f32 1e-06, %v1444_v15 }
 0x5b5   : > { %2214 = vrsqrt.f32 %v1445_v17  ;;  %vm1452_vm8 = vweird.f32 %v1445_v17 }
 0x5bb   : > { %v2215_v18 = vpop.eup %2214 }
 0x5bc   : > { %v1447_v19 = vmul.f32 %v2215_v18, %v1445_v17  ;;  %vm1453_vm7 = vweird.f32 %v2215_v18 }
 0x5bd   : > { %vm1454_vm9 = vmor %vm1452_vm8, %vm1453_vm7 }
 0x5be   : > { %v1448_v20 = vmul.f32 %v2215_v18, %v1447_v19 }
 0x5c0   : > { %v1449_v21 = vmul.f32 0.5, %v1448_v20 }
 0x5c2   : > { %v1450_v22 = vsub.f32 1.5, %v1449_v21 }
 0x5c4   : > { %v1451_v23 = vmul.f32 %v2215_v18, %v1450_v22 }
 0x5c6   : > { %v1455_v25 = vsel %vm1454_vm9, %v2215_v18, %v1451_v23 }
 0x5c7   : > { %v1456_v27 = vmul.f32 %v1455_v25, %v1439_v7 }
 0x5c9   : > { %v1461_v28 = vmul.f32 %v2190_v24, %v1456_v27 }
 0x5cb   : > { %v1466_v29 = vadd.f32 %v2191_v26, %v1461_v28 }
 0x5cd   : > { %v1467_v30 = vpack.c.bf16 %v1466_v29, %v1466_v29 }
 0x5cf   : > { %1996 = vmatmul.msk.bf16.vlgmr.msrb.gmra.mxu0 %vm1053_vm1, %v1467_v30 }
 0x64c   : > { %v1500_v34 = vpop.f32.mrf.mxu0 }
 0x64d   : > { %v1501_v35 = vadd.f32 %v2192_v33, %v1500_v34 }
 0x64f   : > { %v1504_v36 = vmax.f32 %v1501_v35, 0.0 }
 0x651   : > { %v1505_v37 = vpack.c.bf16 %v1504_v36, %v1504_v36 }
 0x653   : > { %2013 = vmatmul.msk.bf16.vlgmr.msrb.gmra.mxu1 %vm1542_vm10, %v1505_v37 }
 0x654   : > { %v1502_v38 = vpop.f32.mrf.mxu0 }
 0x6d0   : > { %v1555_v40 = vpop.f32.mrf.mxu1 }
 0x6d1   : > { %v1556_v41 = vadd.f32 %v2193_v39, %v1555_v40 }
 0x6d3   : > { %v1559_v42 = vadd.f32 %v1556_v41, %v1466_v29 }
 0x6d5   : > { %v1560_v43 = vsel %vm1053_vm1, %v1559_v42, 0.0 }
 0x6d6   : > { %1561 = vadd.xlane.f32.xlu2 %v1560_v43 }
 0x6d8   : > { %v1557_v44 = vpop.f32.mrf.mxu1 }
 0x749   : > { %v1562_v45 = vpop.xlane.xlu2 %1561 }
 0x74a   : > { %v1563_v46 = vmul.f32 %v1562_v45, %v1437_v5 }
 0x74c   : > { %v1564_v47 = vsub.f32 %v1559_v42, %v1563_v46 }
 0x74e   : > { %v1565_v48 = vmul.f32 %v1564_v47, %v1564_v47 }
 0x750   : > { %v1566_v49 = vsel %vm1053_vm1, %v1565_v48, 0.0 }
 0x751   : > { %1567 = vadd.xlane.f32.xlu1 %v1566_v49 }
 0x7c4   : > { %v1568_v50 = vpop.xlane.xlu1 %1567 }
 0x7c5   : > { %v1569_v51 = vmul.f32 %v1568_v50, %v1437_v5 }
 0x7c7   : > { %v1570_v52 = vadd.f32 1e-06, %v1569_v51 }
 0x7c9   : > { %2216 = vrsqrt.f32 %v1570_v52  ;;  %vm1577_vm12 = vweird.f32 %v1570_v52 }
 0x7cf   : > { %v2217_v53 = vpop.eup %2216 }
 0x7d0   : > { %v1572_v54 = vmul.f32 %v2217_v53, %v1570_v52  ;;  %vm1578_vm11 = vweird.f32 %v2217_v53 }
 0x7d1   : > { %vm1579_vm13 = vmor %vm1577_vm12, %vm1578_vm11 }
 0x7d2   : > { %v1573_v55 = vmul.f32 %v2217_v53, %v1572_v54 }
 0x7d4   : > { %v1574_v56 = vmul.f32 0.5, %v1573_v55 }
 0x7d6   : > { %v1575_v57 = vsub.f32 1.5, %v1574_v56 }
 0x7d8   : > { %v1576_v58 = vmul.f32 %v2217_v53, %v1575_v57 }
 0x7da   : > { %v1580_v60 = vsel %vm1579_vm13, %v2217_v53, %v1576_v58 }
 0x7db   : > { %v1581_v61 = vmul.f32 %v1580_v60, %v1564_v47 }
 0x7dd   : > { %v1586_v63 = vmul.f32 %v2194_v59, %v1581_v61 }
 0x7df   : > { %v1591_v0 = vadd.f32 %v2195_v62, %v1586_v63 }
 0x7e1   : > { %1592 = vst.msk [vmem:[%s2983_s19] sm:$0xff] %vm1053_vm1, %v1591_v0 }
 0x7e2   : > { %2455 = shalt.err (!%p2452_p0)
}
 0x7e3   : > { %2054 = dma.vmem_to_hbm [thread:$0]  (%p2839_p10), %s1607_s14, 128, %s1609_s17, %s1594_s5  }
 0x7e4 PF: > { %s3282_s29 = sld [smem:[#allocation30_spill]] }
 0x7e5   : > { %s3283_s19 = sld [smem:[#allocation23_spill]] }
 0x7ea   : > { %p2086_p2 = scmp.ge.s32.totalorder %s3282_s29, 2 }
 0x7eb   : > { %s1620_s21 = sand.u32 1, %s3283_s19  }
 0x7ec   : > { %p2080_p1 = pnand %p2086_p2, %p2843_p9  ;;  %s1621_s7 = scalar_lea.sflag [#allocation4], %s1620_s21 }
 0x7ee   : > { %p2081_p6 = pneg %p2080_p1 }
 0x7f0   : > { %2521 = dma.done.wait (%p2081_p6), %s1621_s7, 128  }
 0x7f1   : > { %2523 = vsyncadd (%p2081_p6), %s1621_s7, 4294967168  ;;  %s44_s3 = sadd.s32 1, %s3282_s29   ;;  %s3285_s0 = sld [smem:[#allocation21_spill]] }
 0x7f2   : > { %p41_p12 = scmp.ge.s32.totalorder %s44_s3, 6   ;;  %s3286_s30 = sld [smem:[#allocation22_spill]] }
 0x7f3   : > { %s3287_s20 = sld [smem:[#allocation33_spill]] }
 0x7f4   : > { %s3288_s21 = sld [smem:[#allocation24_spill]] }
 0x7f5   : > { %s3289_s1 = sld [smem:[#allocation25_spill]] }
 0x7f6   : > { %s3290_s22 = sld [smem:[#allocation37_spill]]  ;;  %43 = sbr.rel (!%p41_p12) target bundleno = 36 (0x24), region = 246 }
 0x7f7   : > { %s3291_s2 = sld [smem:[#allocation28_spill]] }
 0x7f8   : > { %s3292_s23 = sld [smem:[#allocation29_spill]] }
 0x7f9   : > { %s3293_s24 = sld [smem:[#allocation32_spill]] }
 0x7fa   : > { %s3294_s25 = sld [smem:[#allocation34_spill]] }
 0x7fb   :  { %1627 = vsyncpa [#allocation3], 1 }
 0x7fc   :  { %1629 = vsyncpa [#allocation3 + $0x1], 1 }
 0x7fd   :  { %1630 = vsyncpa [#allocation6], 1 }
 0x7fe   :  { %1632 = vsyncpa [#allocation6 + $0x1], 1 }
 0x7ff   :  { %1633 = vsyncpa [#allocation9], 1 }
 0x800   :  { %1635 = vsyncpa [#allocation9 + $0x1], 1 }
 0x801   :  { %1636 = vsyncpa [#allocation12], 1 }
 0x802   :  { %1638 = vsyncpa [#allocation12 + $0x1], 1 }
 0x803   :  { %1639 = vsyncpa [#allocation4], 1 }
 0x804   :  { %1641 = vsyncpa [#allocation4 + $0x1], 1 }

</bundles_post_ra>
